<compile_context>
chip_gen: v6e
topology: v6e:2x2x1
jax: 0.10.0
libtpu: 0.0.40
codegen_flags: <defaults>
</compile_context>

<pallas_src>
import jax
import jax.numpy as jnp
from jax import lax
from jax.experimental import pallas as pl
from jax.experimental.pallas import tpu as pltpu


INPUT = 13
HIDDEN = 64
GATES = 4 * HIDDEN          # 256, lane-dense
FC1 = 32


def _round_up(n, m):
    return (n + m - 1) // m * m


def _sigmoid(x):
    # sigmoid(x) == 0.5 * tanh(0.5 * x) + 0.5 : one EUP transcendental per element
    # instead of exp + reciprocal (3 sigmoids + 2 tanh per step share one EUP slot).
    return 0.5 * jnp.tanh(0.5 * x) + 0.5


# ---------------------------------------------------------------------------
# Kernel 1: input projection, hoisted out of the recurrence.
#   gates_x[r, :] = x[r, :] @ W_ih^T + (b_ih + b_hh)   for all T*B rows at once.
# ---------------------------------------------------------------------------
def input_proj_kernel(x_ref, wih_t_ref, b_ref, gx_ref):
    gx_ref[...] = (
        jnp.dot(x_ref[...], wih_t_ref[...], preferred_element_type=jnp.float32)
        + b_ref[...]
    )


# ---------------------------------------------------------------------------
# Kernel 2: LSTM recurrence over a tile of timesteps.
#   h/c live in persistent VMEM scratch so the carry survives across grid steps
#   (grid axis is "arbitrary" => strictly sequential, double-buffered input DMA).
# ---------------------------------------------------------------------------
def lstm_recurrence_kernel(gx_ref, whh_t_ref, hseq_ref, h_scr, c_scr):
    tile_t = gx_ref.shape[0]
    H = whh_t_ref.shape[0]

    @pl.when(pl.program_id(0) == 0)
    def _init():
        h_scr[...] = jnp.zeros_like(h_scr)
        c_scr[...] = jnp.zeros_like(c_scr)

    whh_t = whh_t_ref[...]           # hoisted: resident for the whole tile

    def step(t, carry):
        h, c = carry
        gates = gx_ref[t] + jnp.dot(h, whh_t, preferred_element_type=jnp.float32)
        i_g = _sigmoid(gates[:, 0 * H:1 * H])
        f_g = _sigmoid(gates[:, 1 * H:2 * H])
        g_g = jnp.tanh(gates[:, 2 * H:3 * H])
        o_g = _sigmoid(gates[:, 3 * H:4 * H])
        c_new = f_g * c + i_g * g_g
        h_new = o_g * jnp.tanh(c_new)
        hseq_ref[t] = h_new          # lane-dense (B_pad, 64) store, no fc work here
        return h_new, c_new

    unroll = min(8, tile_t)          # give the LLO scheduler cross-step visibility
    h, c = lax.fori_loop(0, tile_t, step, (h_scr[...], c_scr[...]), unroll=unroll)
    h_scr[...] = h
    c_scr[...] = c


# ---------------------------------------------------------------------------
# Kernel 3: FC head (fc1 -> fc2), hoisted out of the recurrence.
#   fc1 as an MXU matmul; fc2 (output width 1) as VPU multiply + lane reduction.
#   The single masked (tile_rows, 1) store per tile is off the serial path.
# ---------------------------------------------------------------------------
def fc_head_kernel(h_ref, w1_t_ref, b1_ref, w2_ref, b2_ref, y_ref):
    y1 = (
        jnp.dot(h_ref[...], w1_t_ref[...], preferred_element_type=jnp.float32)
        + b1_ref[...]
    )                                                     # (tile_rows, 32)
    y_ref[...] = jnp.sum(y1 * w2_ref[...], axis=-1, keepdims=True) + b2_ref[...]


# ---------------------------------------------------------------------------
# Wrapper
# ---------------------------------------------------------------------------
def _pick_tile_t(T, B_pad):
    # Keep one (gates_x + h_seq) time-tile around ~4 MiB so double-buffered tiles
    # stay far below the v7x scoped-VMEM limit (64 MiB physical / 32 MiB scoped);
    # v5e/v6e (128 MiB) are then trivially fine.
    per_step_bytes = B_pad * (GATES + HIDDEN) * 4
    cap = max(8, (4 << 20) // per_step_bytes)
    return max(1, min(T, cap, 512))


def rnn_time_forward(x, params):
    """x: (B, T, 13) float32 -> y: (B, T, 1) float32 (matches torch rnn_time.forward)."""
    B, T, F = x.shape
    wih_t, whh_t, b, w1_t, b1, w2, b2 = params
    H = whh_t.shape[0]
    G = whh_t.shape[1]

    B_pad = _round_up(max(B, 8), 8)        # fill f32 sublanes / MXU rows
    tile_t = _pick_tile_t(T, B_pad)
    T_pad = _round_up(T, tile_t)
    n_t = T_pad // tile_t
    rows = T_pad * B_pad
    tile_r = tile_t * B_pad

    # Time-major + pad.  Pad timesteps are appended at the END so they never feed
    # into real outputs; padded batch rows are independent and sliced off.
    x_tm = jnp.transpose(x, (1, 0, 2))                         # (T, B, F)
    x_tm = jnp.pad(x_tm, ((0, T_pad - T), (0, B_pad - B), (0, 0)))
    x_rows = x_tm.reshape(rows, F)

    # 1) Input projection: one big lane-dense matmul, parallel over row tiles
    #    (megacore-shardable on v7x).
    gates_rows = pl.pallas_call(
        input_proj_kernel,
        out_shape=jax.ShapeDtypeStruct((rows, G), jnp.float32),
        grid=(n_t,),
        in_specs=[
            pl.BlockSpec((tile_r, F), lambda i: (i, 0)),
            pl.BlockSpec((F, G), lambda i: (0, 0)),
            pl.BlockSpec((1, G), lambda i: (0, 0)),
        ],
        out_specs=pl.BlockSpec((tile_r, G), lambda i: (i, 0)),
        compiler_params=pltpu.CompilerParams(dimension_semantics=("parallel",)),
    )(x_rows, wih_t, b)
    gates_x = gates_rows.reshape(T_pad, B_pad, G)

    # 2) Serial LSTM recurrence: T-tile grid, h/c in persistent VMEM scratch.
    #    TODO(synk): for large B, add a leading "parallel" batch axis so v7x's two
    #    TensorCores each run half the batch.
    h_seq = pl.pallas_call(
        lstm_recurrence_kernel,
        out_shape=jax.ShapeDtypeStruct((T_pad, B_pad, H), jnp.float32),
        grid=(n_t,),
        in_specs=[
            pl.BlockSpec((tile_t, B_pad, G), lambda i: (i, 0, 0)),
            pl.BlockSpec((H, G), lambda i: (0, 0)),
        ],
        out_specs=pl.BlockSpec((tile_t, B_pad, H), lambda i: (i, 0, 0)),
        scratch_shapes=[
            pltpu.VMEM((B_pad, H), jnp.float32),   # h carry
            pltpu.VMEM((B_pad, H), jnp.float32),   # c carry
        ],
        compiler_params=pltpu.CompilerParams(dimension_semantics=("arbitrary",)),
    )(gates_x, whh_t)

    # 3) FC head on the dense h_seq rows, parallel over row tiles.
    h_rows = h_seq.reshape(rows, H)
    y_rows = pl.pallas_call(
        fc_head_kernel,
        out_shape=jax.ShapeDtypeStruct((rows, 1), jnp.float32),
        grid=(n_t,),
        in_specs=[
            pl.BlockSpec((tile_r, H), lambda i: (i, 0)),
            pl.BlockSpec((H, FC1), lambda i: (0, 0)),
            pl.BlockSpec((1, FC1), lambda i: (0, 0)),
            pl.BlockSpec((1, FC1), lambda i: (0, 0)),
            pl.BlockSpec((1, 1), lambda i: (0, 0)),
        ],
        out_specs=pl.BlockSpec((tile_r, 1), lambda i: (i, 0)),
        compiler_params=pltpu.CompilerParams(dimension_semantics=("parallel",)),
    )(h_rows, w1_t, b1, w2, b2)

    y_tm = y_rows.reshape(T_pad, B_pad, 1)
    return jnp.transpose(y_tm, (1, 0, 2))[:B, :T, :]      # (B, T, 1)


# ---------------------------------------------------------------------------
# Params / reference
# ---------------------------------------------------------------------------
def init_params(key):
    """Deterministic synthetic params with PyTorch-default-style uniform init."""
    ks = jax.random.split(key, 8)
    k_lstm = 1.0 / jnp.sqrt(HIDDEN)
    k_fc1 = 1.0 / jnp.sqrt(HIDDEN)
    k_fc2 = 1.0 / jnp.sqrt(FC1)

    def u(k, shape, scale):
        return jax.random.uniform(k, shape, jnp.float32, -scale, scale)

    w_ih = u(ks[0], (GATES, INPUT), k_lstm)       # (4H, F) torch layout, gates i,f,g,o
    w_hh = u(ks[1], (GATES, HIDDEN), k_lstm)      # (4H, H)
    b_ih = u(ks[2], (GATES,), k_lstm)
    b_hh = u(ks[3], (GATES,), k_lstm)
    w1 = u(ks[4], (FC1, HIDDEN), k_fc1)           # (32, 64)
    b1 = u(ks[5], (FC1,), k_fc1)
    w2 = u(ks[6], (1, FC1), k_fc2)                # (1, 32)
    b2 = u(ks[7], (1,), k_fc2)

    params = (
        jnp.transpose(w_ih),                      # (F, 4H)
        jnp.transpose(w_hh),                      # (H, 4H)
        (b_ih + b_hh).reshape(1, GATES),          # (1, 4H)
        jnp.transpose(w1),                        # (H, 32)
        b1.reshape(1, FC1),                       # (1, 32)
        w2,                                       # (1, 32)  fc2 weight as a row
        b2.reshape(1, 1),                         # (1, 1)
    )
    return params


def reference_forward(x, params):
    """Pure-JAX reference (same math as torch rnn_time.forward, lax.scan)."""
    wih_t, whh_t, b, w1_t, b1, w2, b2 = params
    B, T, F = x.shape
    H = HIDDEN

    def step(carry, x_t):
        h, c = carry
        gates = x_t @ wih_t + h @ whh_t + b
        i_g = jax.nn.sigmoid(gates[:, 0 * H:1 * H])
        f_g = jax.nn.sigmoid(gates[:, 1 * H:2 * H])
        g_g = jnp.tanh(gates[:, 2 * H:3 * H])
        o_g = jax.nn.sigmoid(gates[:, 3 * H:4 * H])
        c = f_g * c + i_g * g_g
        h = o_g * jnp.tanh(c)
        return (h, c), h

    x_tm = jnp.transpose(x, (1, 0, 2))
    (_, _), h_seq = lax.scan(step, (jnp.zeros((B, H)), jnp.zeros((B, H))), x_tm)
    r_out = jnp.transpose(h_seq, (1, 0, 2))       # (B, T, H)
    y = r_out @ w1_t + b1
    y = y @ w2.T + b2
    return y


if __name__ == "__main__":
    key = jax.random.PRNGKey(0)
    k_param, k_x = jax.random.split(key)

    B, T = 2, 8
    x = jax.random.normal(k_x, (B, T, INPUT), jnp.float32)   # batch-first like nn.LSTM(batch_first=True)
    params = init_params(k_param)

    fwd = jax.jit(lambda xx: rnn_time_forward(xx, params))
    y = jax.block_until_ready(fwd(x))

    y_ref = reference_forward(x, params)
    assert y.shape == (B, T, 1)
    assert jnp.allclose(y, y_ref, atol=3e-5, rtol=3e-5), "mismatch vs JAX reference"

    print("KERNEL_OK")
</pallas_src>

<mosaic_0001>
module attributes {stable_mosaic.version = 11 : i64} {
  func.func @input_proj_kernel(%arg0: i32, %arg1: memref<64x13xf32, #tpu.memory_space<vmem>>, %arg2: memref<13x256xf32, #tpu.memory_space<vmem>>, %arg3: memref<1x256xf32, #tpu.memory_space<vmem>>, %arg4: memref<64x256xf32, #tpu.memory_space<vmem>>) attributes {dimension_semantics = [#tpu.dimension_semantics<parallel>], iteration_bounds = array<i64: 1>, scalar_prefetch = 0 : i64, scratch_operands = 0 : i64, tpu.core_type = #tpu.core_type<tc>, window_params = [{transform_indices = @transform_0, window_bounds = array<i64: 64, 13>}, {pipeline_mode = #tpu.pipeline_mode<synchronous>, transform_indices = @transform_1, window_bounds = array<i64: 13, 256>}, {pipeline_mode = #tpu.pipeline_mode<synchronous>, transform_indices = @transform_2, window_bounds = array<i64: 1, 256>}, {transform_indices = @transform_3, window_bounds = array<i64: 64, 256>}]} {
    %c0 = arith.constant 0 : index
    %c0_0 = arith.constant 0 : index
    %0 = vector.load %arg1[%c0, %c0_0] : memref<64x13xf32, #tpu.memory_space<vmem>>, vector<64x13xf32>
    %c0_1 = arith.constant 0 : index
    %c0_2 = arith.constant 0 : index
    %1 = vector.load %arg2[%c0_1, %c0_2] : memref<13x256xf32, #tpu.memory_space<vmem>>, vector<13x256xf32>
    %cst = arith.constant dense<0.000000e+00> : vector<64x256xf32>
    %2 = tpu.matmul %0, %1, %cst {dimension_numbers = #tpu.dot_dimension_numbers<[1], [0], [0], [1], [0, 0, 1, 1], [], []>} : vector<64x13xf32>, vector<13x256xf32>, vector<64x256xf32> -> vector<64x256xf32>
    %c0_3 = arith.constant 0 : index
    %c0_4 = arith.constant 0 : index
    %3 = vector.load %arg3[%c0_3, %c0_4] : memref<1x256xf32, #tpu.memory_space<vmem>>, vector<1x256xf32>
    %4 = vector.broadcast %3 : vector<1x256xf32> to vector<64x256xf32>
    %5 = arith.addf %2, %4 : vector<64x256xf32>
    %c0_5 = arith.constant 0 : index
    %c0_6 = arith.constant 0 : index
    %6 = vector.load %arg4[%c0_5, %c0_6] : memref<64x256xf32, #tpu.memory_space<vmem>>, vector<64x256xf32>
    tpu.vector_store %arg4[%c0_5, %c0_6], %5 {strides = array<i32>} : memref<64x256xf32, #tpu.memory_space<vmem>>, vector<64x256xf32>,
    return
  }
  func.func @transform_0(%arg0: i32) -> (i32, i32) {
    %c0_i32 = arith.constant 0 : i32
    %c0_i32_0 = arith.constant 0 : i32
    return %arg0, %c0_i32 : i32, i32
  }
  func.func @transform_1(%arg0: i32) -> (i32, i32) {
    %c0_i32 = arith.constant 0 : i32
    %c0_i32_0 = arith.constant 0 : i32
    %c0_i32_1 = arith.constant 0 : i32
    return %c0_i32, %c0_i32_0 : i32, i32
  }
  func.func @transform_2(%arg0: i32) -> (i32, i32) {
    %c0_i32 = arith.constant 0 : i32
    %c0_i32_0 = arith.constant 0 : i32
    %c0_i32_1 = arith.constant 0 : i32
    return %c0_i32, %c0_i32_0 : i32, i32
  }
  func.func @transform_3(%arg0: i32) -> (i32, i32) {
    %c0_i32 = arith.constant 0 : i32
    %c0_i32_0 = arith.constant 0 : i32
    return %arg0, %c0_i32 : i32, i32
  }
}

module attributes {stable_mosaic.version = 11 : i64} {
  func.func @lstm_recurrence_kernel(%arg0: i32, %arg1: memref<8x8x256xf32, #tpu.memory_space<vmem>>, %arg2: memref<64x256xf32, #tpu.memory_space<vmem>>, %arg3: memref<8x8x64xf32, #tpu.memory_space<vmem>>, %arg4: memref<8x64xf32, #tpu.memory_space<vmem>>, %arg5: memref<8x64xf32, #tpu.memory_space<vmem>>) attributes {dimension_semantics = [#tpu.dimension_semantics<arbitrary>], iteration_bounds = array<i64: 1>, scalar_prefetch = 0 : i64, scratch_operands = 2 : i64, tpu.core_type = #tpu.core_type<tc>, window_params = [{transform_indices = @transform_0, window_bounds = array<i64: 8, 8, 256>}, {pipeline_mode = #tpu.pipeline_mode<synchronous>, transform_indices = @transform_1, window_bounds = array<i64: 64, 256>}, {transform_indices = @transform_2, window_bounds = array<i64: 8, 8, 64>}]} {
    %c0_i32 = arith.constant 0 : i32
    %0 = arith.cmpi eq, %arg0, %c0_i32 : i32
    %1 = arith.extui %0 : i1 to i32
    %c0_i32_0 = arith.constant 0 : i32
    %2 = arith.cmpi ne, %1, %c0_i32_0 : i32
    scf.if %2 {
      %cst_122 = arith.constant 0.000000e+00 : f32
      %328 = vector.broadcast %cst_122 : f32 to vector<8x64xf32>
      %c0_123 = arith.constant 0 : index
      %c0_124 = arith.constant 0 : index
      %329 = vector.load %arg4[%c0_123, %c0_124] : memref<8x64xf32, #tpu.memory_space<vmem>>, vector<8x64xf32>
      tpu.vector_store %arg4[%c0_123, %c0_124], %328 {strides = array<i32>} : memref<8x64xf32, #tpu.memory_space<vmem>>, vector<8x64xf32>,
      %cst_125 = arith.constant 0.000000e+00 : f32
      %330 = vector.broadcast %cst_125 : f32 to vector<8x64xf32>
      %c0_126 = arith.constant 0 : index
      %c0_127 = arith.constant 0 : index
      %331 = vector.load %arg5[%c0_126, %c0_127] : memref<8x64xf32, #tpu.memory_space<vmem>>, vector<8x64xf32>
      tpu.vector_store %arg5[%c0_126, %c0_127], %330 {strides = array<i32>} : memref<8x64xf32, #tpu.memory_space<vmem>>, vector<8x64xf32>,
    } else {
    }
    %c0 = arith.constant 0 : index
    %c0_1 = arith.constant 0 : index
    %3 = vector.load %arg2[%c0, %c0_1] : memref<64x256xf32, #tpu.memory_space<vmem>>, vector<64x256xf32>
    %c0_2 = arith.constant 0 : index
    %c0_3 = arith.constant 0 : index
    %4 = vector.load %arg4[%c0_2, %c0_3] : memref<8x64xf32, #tpu.memory_space<vmem>>, vector<8x64xf32>
    %c0_4 = arith.constant 0 : index
    %c0_5 = arith.constant 0 : index
    %5 = vector.load %arg5[%c0_4, %c0_5] : memref<8x64xf32, #tpu.memory_space<vmem>>, vector<8x64xf32>
    %c0_i32_6 = arith.constant 0 : i32
    %6 = arith.index_cast %c0_i32_6 : i32 to index
    %c0_7 = arith.constant 0 : index
    %c0_8 = arith.constant 0 : index
    %7 = vector.load %arg1[%6, %c0_7, %c0_8] : memref<8x8x256xf32, #tpu.memory_space<vmem>>, vector<1x8x256xf32>
    %8 = vector.shape_cast %7 : vector<1x8x256xf32> to vector<8x256xf32>
    %cst = arith.constant dense<0.000000e+00> : vector<8x256xf32>
    %9 = tpu.matmul %4, %3, %cst {dimension_numbers = #tpu.dot_dimension_numbers<[1], [0], [0], [1], [0, 0, 1, 1], [], []>} : vector<8x64xf32>, vector<64x256xf32>, vector<8x256xf32> -> vector<8x256xf32>
    %10 = arith.addf %8, %9 : vector<8x256xf32>
    %11 = vector.extract_strided_slice %10 {offsets = [0, 0], sizes = [8, 64], strides = [1, 1]} : vector<8x256xf32> to vector<8x64xf32>
    %cst_9 = arith.constant 5.000000e-01 : f32
    %12 = vector.broadcast %cst_9 : f32 to vector<8x64xf32>
    %13 = arith.mulf %12, %11 : vector<8x64xf32>
    %14 = math.tanh %13 : vector<8x64xf32>
    %cst_10 = arith.constant 5.000000e-01 : f32
    %15 = vector.broadcast %cst_10 : f32 to vector<8x64xf32>
    %16 = arith.mulf %15, %14 : vector<8x64xf32>
    %cst_11 = arith.constant 5.000000e-01 : f32
    %17 = vector.broadcast %cst_11 : f32 to vector<8x64xf32>
    %18 = arith.addf %16, %17 : vector<8x64xf32>
    %19 = vector.extract_strided_slice %10 {offsets = [0, 64], sizes = [8, 64], strides = [1, 1]} : vector<8x256xf32> to vector<8x64xf32>
    %cst_12 = arith.constant 5.000000e-01 : f32
    %20 = vector.broadcast %cst_12 : f32 to vector<8x64xf32>
    %21 = arith.mulf %20, %19 : vector<8x64xf32>
    %22 = math.tanh %21 : vector<8x64xf32>
    %cst_13 = arith.constant 5.000000e-01 : f32
    %23 = vector.broadcast %cst_13 : f32 to vector<8x64xf32>
    %24 = arith.mulf %23, %22 : vector<8x64xf32>
    %cst_14 = arith.constant 5.000000e-01 : f32
    %25 = vector.broadcast %cst_14 : f32 to vector<8x64xf32>
    %26 = arith.addf %24, %25 : vector<8x64xf32>
    %27 = vector.extract_strided_slice %10 {offsets = [0, 128], sizes = [8, 64], strides = [1, 1]} : vector<8x256xf32> to vector<8x64xf32>
    %28 = math.tanh %27 : vector<8x64xf32>
    %29 = vector.extract_strided_slice %10 {offsets = [0, 192], sizes = [8, 64], strides = [1, 1]} : vector<8x256xf32> to vector<8x64xf32>
    %cst_15 = arith.constant 5.000000e-01 : f32
    %30 = vector.broadcast %cst_15 : f32 to vector<8x64xf32>
    %31 = arith.mulf %30, %29 : vector<8x64xf32>
    %32 = math.tanh %31 : vector<8x64xf32>
    %cst_16 = arith.constant 5.000000e-01 : f32
    %33 = vector.broadcast %cst_16 : f32 to vector<8x64xf32>
    %34 = arith.mulf %33, %32 : vector<8x64xf32>
    %cst_17 = arith.constant 5.000000e-01 : f32
    %35 = vector.broadcast %cst_17 : f32 to vector<8x64xf32>
    %36 = arith.addf %34, %35 : vector<8x64xf32>
    %37 = arith.mulf %26, %5 : vector<8x64xf32>
    %38 = arith.mulf %18, %28 : vector<8x64xf32>
    %39 = arith.addf %37, %38 : vector<8x64xf32>
    %40 = math.tanh %39 : vector<8x64xf32>
    %41 = arith.mulf %36, %40 : vector<8x64xf32>
    %42 = arith.index_cast %c0_i32_6 : i32 to index
    %c0_18 = arith.constant 0 : index
    %c0_19 = arith.constant 0 : index
    %43 = vector.load %arg3[%42, %c0_18, %c0_19] : memref<8x8x64xf32, #tpu.memory_space<vmem>>, vector<1x8x64xf32>
    %44 = vector.shape_cast %43 : vector<1x8x64xf32> to vector<8x64xf32>
    %45 = vector.shape_cast %41 : vector<8x64xf32> to vector<1x8x64xf32>
    tpu.vector_store %arg3[%42, %c0_18, %c0_19], %45 {strides = array<i32>} : memref<8x8x64xf32, #tpu.memory_space<vmem>>, vector<1x8x64xf32>,
    %c1_i32 = arith.constant 1 : i32
    %46 = arith.index_cast %c1_i32 : i32 to index
    %c0_20 = arith.constant 0 : index
    %c0_21 = arith.constant 0 : index
    %47 = vector.load %arg1[%46, %c0_20, %c0_21] : memref<8x8x256xf32, #tpu.memory_space<vmem>>, vector<1x8x256xf32>
    %48 = vector.shape_cast %47 : vector<1x8x256xf32> to vector<8x256xf32>
    %cst_22 = arith.constant dense<0.000000e+00> : vector<8x256xf32>
    %49 = tpu.matmul %41, %3, %cst_22 {dimension_numbers = #tpu.dot_dimension_numbers<[1], [0], [0], [1], [0, 0, 1, 1], [], []>} : vector<8x64xf32>, vector<64x256xf32>, vector<8x256xf32> -> vector<8x256xf32>
    %50 = arith.addf %48, %49 : vector<8x256xf32>
    %51 = vector.extract_strided_slice %50 {offsets = [0, 0], sizes = [8, 64], strides = [1, 1]} : vector<8x256xf32> to vector<8x64xf32>
    %cst_23 = arith.constant 5.000000e-01 : f32
    %52 = vector.broadcast %cst_23 : f32 to vector<8x64xf32>
    %53 = arith.mulf %52, %51 : vector<8x64xf32>
    %54 = math.tanh %53 : vector<8x64xf32>
    %cst_24 = arith.constant 5.000000e-01 : f32
    %55 = vector.broadcast %cst_24 : f32 to vector<8x64xf32>
    %56 = arith.mulf %55, %54 : vector<8x64xf32>
    %cst_25 = arith.constant 5.000000e-01 : f32
    %57 = vector.broadcast %cst_25 : f32 to vector<8x64xf32>
    %58 = arith.addf %56, %57 : vector<8x64xf32>
    %59 = vector.extract_strided_slice %50 {offsets = [0, 64], sizes = [8, 64], strides = [1, 1]} : vector<8x256xf32> to vector<8x64xf32>
    %cst_26 = arith.constant 5.000000e-01 : f32
    %60 = vector.broadcast %cst_26 : f32 to vector<8x64xf32>
    %61 = arith.mulf %60, %59 : vector<8x64xf32>
    %62 = math.tanh %61 : vector<8x64xf32>
    %cst_27 = arith.constant 5.000000e-01 : f32
    %63 = vector.broadcast %cst_27 : f32 to vector<8x64xf32>
    %64 = arith.mulf %63, %62 : vector<8x64xf32>
    %cst_28 = arith.constant 5.000000e-01 : f32
    %65 = vector.broadcast %cst_28 : f32 to vector<8x64xf32>
    %66 = arith.addf %64, %65 : vector<8x64xf32>
    %67 = vector.extract_strided_slice %50 {offsets = [0, 128], sizes = [8, 64], strides = [1, 1]} : vector<8x256xf32> to vector<8x64xf32>
    %68 = math.tanh %67 : vector<8x64xf32>
    %69 = vector.extract_strided_slice %50 {offsets = [0, 192], sizes = [8, 64], strides = [1, 1]} : vector<8x256xf32> to vector<8x64xf32>
    %cst_29 = arith.constant 5.000000e-01 : f32
    %70 = vector.broadcast %cst_29 : f32 to vector<8x64xf32>
    %71 = arith.mulf %70, %69 : vector<8x64xf32>
    %72 = math.tanh %71 : vector<8x64xf32>
    %cst_30 = arith.constant 5.000000e-01 : f32
    %73 = vector.broadcast %cst_30 : f32 to vector<8x64xf32>
    %74 = arith.mulf %73, %72 : vector<8x64xf32>
    %cst_31 = arith.constant 5.000000e-01 : f32
    %75 = vector.broadcast %cst_31 : f32 to vector<8x64xf32>
    %76 = arith.addf %74, %75 : vector<8x64xf32>
    %77 = arith.mulf %66, %39 : vector<8x64xf32>
    %78 = arith.mulf %58, %68 : vector<8x64xf32>
    %79 = arith.addf %77, %78 : vector<8x64xf32>
    %80 = math.tanh %79 : vector<8x64xf32>
    %81 = arith.mulf %76, %80 : vector<8x64xf32>
    %82 = arith.index_cast %c1_i32 : i32 to index
    %c0_32 = arith.constant 0 : index
    %c0_33 = arith.constant 0 : index
    %83 = vector.load %arg3[%82, %c0_32, %c0_33] : memref<8x8x64xf32, #tpu.memory_space<vmem>>, vector<1x8x64xf32>
    %84 = vector.shape_cast %83 : vector<1x8x64xf32> to vector<8x64xf32>
    %85 = vector.shape_cast %81 : vector<8x64xf32> to vector<1x8x64xf32>
    tpu.vector_store %arg3[%82, %c0_32, %c0_33], %85 {strides = array<i32>} : memref<8x8x64xf32, #tpu.memory_space<vmem>>, vector<1x8x64xf32>,
    %c2_i32 = arith.constant 2 : i32
    %86 = arith.index_cast %c2_i32 : i32 to index
    %c0_34 = arith.constant 0 : index
    %c0_35 = arith.constant 0 : index
    %87 = vector.load %arg1[%86, %c0_34, %c0_35] : memref<8x8x256xf32, #tpu.memory_space<vmem>>, vector<1x8x256xf32>
    %88 = vector.shape_cast %87 : vector<1x8x256xf32> to vector<8x256xf32>
    %cst_36 = arith.constant dense<0.000000e+00> : vector<8x256xf32>
    %89 = tpu.matmul %81, %3, %cst_36 {dimension_numbers = #tpu.dot_dimension_numbers<[1], [0], [0], [1], [0, 0, 1, 1], [], []>} : vector<8x64xf32>, vector<64x256xf32>, vector<8x256xf32> -> vector<8x256xf32>
    %90 = arith.addf %88, %89 : vector<8x256xf32>
    %91 = vector.extract_strided_slice %90 {offsets = [0, 0], sizes = [8, 64], strides = [1, 1]} : vector<8x256xf32> to vector<8x64xf32>
    %cst_37 = arith.constant 5.000000e-01 : f32
    %92 = vector.broadcast %cst_37 : f32 to vector<8x64xf32>
    %93 = arith.mulf %92, %91 : vector<8x64xf32>
    %94 = math.tanh %93 : vector<8x64xf32>
    %cst_38 = arith.constant 5.000000e-01 : f32
    %95 = vector.broadcast %cst_38 : f32 to vector<8x64xf32>
    %96 = arith.mulf %95, %94 : vector<8x64xf32>
    %cst_39 = arith.constant 5.000000e-01 : f32
    %97 = vector.broadcast %cst_39 : f32 to vector<8x64xf32>
    %98 = arith.addf %96, %97 : vector<8x64xf32>
    %99 = vector.extract_strided_slice %90 {offsets = [0, 64], sizes = [8, 64], strides = [1, 1]} : vector<8x256xf32> to vector<8x64xf32>
    %cst_40 = arith.constant 5.000000e-01 : f32
    %100 = vector.broadcast %cst_40 : f32 to vector<8x64xf32>
    %101 = arith.mulf %100, %99 : vector<8x64xf32>
    %102 = math.tanh %101 : vector<8x64xf32>
    %cst_41 = arith.constant 5.000000e-01 : f32
    %103 = vector.broadcast %cst_41 : f32 to vector<8x64xf32>
    %104 = arith.mulf %103, %102 : vector<8x64xf32>
    %cst_42 = arith.constant 5.000000e-01 : f32
    %105 = vector.broadcast %cst_42 : f32 to vector<8x64xf32>
    %106 = arith.addf %104, %105 : vector<8x64xf32>
    %107 = vector.extract_strided_slice %90 {offsets = [0, 128], sizes = [8, 64], strides = [1, 1]} : vector<8x256xf32> to vector<8x64xf32>
    %108 = math.tanh %107 : vector<8x64xf32>
    %109 = vector.extract_strided_slice %90 {offsets = [0, 192], sizes = [8, 64], strides = [1, 1]} : vector<8x256xf32> to vector<8x64xf32>
    %cst_43 = arith.constant 5.000000e-01 : f32
    %110 = vector.broadcast %cst_43 : f32 to vector<8x64xf32>
    %111 = arith.mulf %110, %109 : vector<8x64xf32>
    %112 = math.tanh %111 : vector<8x64xf32>
    %cst_44 = arith.constant 5.000000e-01 : f32
    %113 = vector.broadcast %cst_44 : f32 to vector<8x64xf32>
    %114 = arith.mulf %113, %112 : vector<8x64xf32>
    %cst_45 = arith.constant 5.000000e-01 : f32
    %115 = vector.broadcast %cst_45 : f32 to vector<8x64xf32>
    %116 = arith.addf %114, %115 : vector<8x64xf32>
    %117 = arith.mulf %106, %79 : vector<8x64xf32>
    %118 = arith.mulf %98, %108 : vector<8x64xf32>
    %119 = arith.addf %117, %118 : vector<8x64xf32>
    %120 = math.tanh %119 : vector<8x64xf32>
    %121 = arith.mulf %116, %120 : vector<8x64xf32>
    %122 = arith.index_cast %c2_i32 : i32 to index
    %c0_46 = arith.constant 0 : index
    %c0_47 = arith.constant 0 : index
    %123 = vector.load %arg3[%122, %c0_46, %c0_47] : memref<8x8x64xf32, #tpu.memory_space<vmem>>, vector<1x8x64xf32>
    %124 = vector.shape_cast %123 : vector<1x8x64xf32> to vector<8x64xf32>
    %125 = vector.shape_cast %121 : vector<8x64xf32> to vector<1x8x64xf32>
    tpu.vector_store %arg3[%122, %c0_46, %c0_47], %125 {strides = array<i32>} : memref<8x8x64xf32, #tpu.memory_space<vmem>>, vector<1x8x64xf32>,
    %c3_i32 = arith.constant 3 : i32
    %126 = arith.index_cast %c3_i32 : i32 to index
    %c0_48 = arith.constant 0 : index
    %c0_49 = arith.constant 0 : index
    %127 = vector.load %arg1[%126, %c0_48, %c0_49] : memref<8x8x256xf32, #tpu.memory_space<vmem>>, vector<1x8x256xf32>
    %128 = vector.shape_cast %127 : vector<1x8x256xf32> to vector<8x256xf32>
    %cst_50 = arith.constant dense<0.000000e+00> : vector<8x256xf32>
    %129 = tpu.matmul %121, %3, %cst_50 {dimension_numbers = #tpu.dot_dimension_numbers<[1], [0], [0], [1], [0, 0, 1, 1], [], []>} : vector<8x64xf32>, vector<64x256xf32>, vector<8x256xf32> -> vector<8x256xf32>
    %130 = arith.addf %128, %129 : vector<8x256xf32>
    %131 = vector.extract_strided_slice %130 {offsets = [0, 0], sizes = [8, 64], strides = [1, 1]} : vector<8x256xf32> to vector<8x64xf32>
    %cst_51 = arith.constant 5.000000e-01 : f32
    %132 = vector.broadcast %cst_51 : f32 to vector<8x64xf32>
    %133 = arith.mulf %132, %131 : vector<8x64xf32>
    %134 = math.tanh %133 : vector<8x64xf32>
    %cst_52 = arith.constant 5.000000e-01 : f32
    %135 = vector.broadcast %cst_52 : f32 to vector<8x64xf32>
    %136 = arith.mulf %135, %134 : vector<8x64xf32>
    %cst_53 = arith.constant 5.000000e-01 : f32
    %137 = vector.broadcast %cst_53 : f32 to vector<8x64xf32>
    %138 = arith.addf %136, %137 : vector<8x64xf32>
    %139 = vector.extract_strided_slice %130 {offsets = [0, 64], sizes = [8, 64], strides = [1, 1]} : vector<8x256xf32> to vector<8x64xf32>
    %cst_54 = arith.constant 5.000000e-01 : f32
    %140 = vector.broadcast %cst_54 : f32 to vector<8x64xf32>
    %141 = arith.mulf %140, %139 : vector<8x64xf32>
    %142 = math.tanh %141 : vector<8x64xf32>
    %cst_55 = arith.constant 5.000000e-01 : f32
    %143 = vector.broadcast %cst_55 : f32 to vector<8x64xf32>
    %144 = arith.mulf %143, %142 : vector<8x64xf32>
    %cst_56 = arith.constant 5.000000e-01 : f32
    %145 = vector.broadcast %cst_56 : f32 to vector<8x64xf32>
    %146 = arith.addf %144, %145 : vector<8x64xf32>
    %147 = vector.extract_strided_slice %130 {offsets = [0, 128], sizes = [8, 64], strides = [1, 1]} : vector<8x256xf32> to vector<8x64xf32>
    %148 = math.tanh %147 : vector<8x64xf32>
    %149 = vector.extract_strided_slice %130 {offsets = [0, 192], sizes = [8, 64], strides = [1, 1]} : vector<8x256xf32> to vector<8x64xf32>
    %cst_57 = arith.constant 5.000000e-01 : f32
    %150 = vector.broadcast %cst_57 : f32 to vector<8x64xf32>
    %151 = arith.mulf %150, %149 : vector<8x64xf32>
    %152 = math.tanh %151 : vector<8x64xf32>
    %cst_58 = arith.constant 5.000000e-01 : f32
    %153 = vector.broadcast %cst_58 : f32 to vector<8x64xf32>
    %154 = arith.mulf %153, %152 : vector<8x64xf32>
    %cst_59 = arith.constant 5.000000e-01 : f32
    %155 = vector.broadcast %cst_59 : f32 to vector<8x64xf32>
    %156 = arith.addf %154, %155 : vector<8x64xf32>
    %157 = arith.mulf %146, %119 : vector<8x64xf32>
    %158 = arith.mulf %138, %148 : vector<8x64xf32>
    %159 = arith.addf %157, %158 : vector<8x64xf32>
    %160 = math.tanh %159 : vector<8x64xf32>
    %161 = arith.mulf %156, %160 : vector<8x64xf32>
    %162 = arith.index_cast %c3_i32 : i32 to index
    %c0_60 = arith.constant 0 : index
    %c0_61 = arith.constant 0 : index
    %163 = vector.load %arg3[%162, %c0_60, %c0_61] : memref<8x8x64xf32, #tpu.memory_space<vmem>>, vector<1x8x64xf32>
    %164 = vector.shape_cast %163 : vector<1x8x64xf32> to vector<8x64xf32>
    %165 = vector.shape_cast %161 : vector<8x64xf32> to vector<1x8x64xf32>
    tpu.vector_store %arg3[%162, %c0_60, %c0_61], %165 {strides = array<i32>} : memref<8x8x64xf32, #tpu.memory_space<vmem>>, vector<1x8x64xf32>,
    %c4_i32 = arith.constant 4 : i32
    %166 = arith.index_cast %c4_i32 : i32 to index
    %c0_62 = arith.constant 0 : index
    %c0_63 = arith.constant 0 : index
    %167 = vector.load %arg1[%166, %c0_62, %c0_63] : memref<8x8x256xf32, #tpu.memory_space<vmem>>, vector<1x8x256xf32>
    %168 = vector.shape_cast %167 : vector<1x8x256xf32> to vector<8x256xf32>
    %cst_64 = arith.constant dense<0.000000e+00> : vector<8x256xf32>
    %169 = tpu.matmul %161, %3, %cst_64 {dimension_numbers = #tpu.dot_dimension_numbers<[1], [0], [0], [1], [0, 0, 1, 1], [], []>} : vector<8x64xf32>, vector<64x256xf32>, vector<8x256xf32> -> vector<8x256xf32>
    %170 = arith.addf %168, %169 : vector<8x256xf32>
    %171 = vector.extract_strided_slice %170 {offsets = [0, 0], sizes = [8, 64], strides = [1, 1]} : vector<8x256xf32> to vector<8x64xf32>
    %cst_65 = arith.constant 5.000000e-01 : f32
    %172 = vector.broadcast %cst_65 : f32 to vector<8x64xf32>
    %173 = arith.mulf %172, %171 : vector<8x64xf32>
    %174 = math.tanh %173 : vector<8x64xf32>
    %cst_66 = arith.constant 5.000000e-01 : f32
    %175 = vector.broadcast %cst_66 : f32 to vector<8x64xf32>
    %176 = arith.mulf %175, %174 : vector<8x64xf32>
    %cst_67 = arith.constant 5.000000e-01 : f32
    %177 = vector.broadcast %cst_67 : f32 to vector<8x64xf32>
    %178 = arith.addf %176, %177 : vector<8x64xf32>
    %179 = vector.extract_strided_slice %170 {offsets = [0, 64], sizes = [8, 64], strides = [1, 1]} : vector<8x256xf32> to vector<8x64xf32>
    %cst_68 = arith.constant 5.000000e-01 : f32
    %180 = vector.broadcast %cst_68 : f32 to vector<8x64xf32>
    %181 = arith.mulf %180, %179 : vector<8x64xf32>
    %182 = math.tanh %181 : vector<8x64xf32>
    %cst_69 = arith.constant 5.000000e-01 : f32
    %183 = vector.broadcast %cst_69 : f32 to vector<8x64xf32>
    %184 = arith.mulf %183, %182 : vector<8x64xf32>
    %cst_70 = arith.constant 5.000000e-01 : f32
    %185 = vector.broadcast %cst_70 : f32 to vector<8x64xf32>
    %186 = arith.addf %184, %185 : vector<8x64xf32>
    %187 = vector.extract_strided_slice %170 {offsets = [0, 128], sizes = [8, 64], strides = [1, 1]} : vector<8x256xf32> to vector<8x64xf32>
    %188 = math.tanh %187 : vector<8x64xf32>
    %189 = vector.extract_strided_slice %170 {offsets = [0, 192], sizes = [8, 64], strides = [1, 1]} : vector<8x256xf32> to vector<8x64xf32>
    %cst_71 = arith.constant 5.000000e-01 : f32
    %190 = vector.broadcast %cst_71 : f32 to vector<8x64xf32>
    %191 = arith.mulf %190, %189 : vector<8x64xf32>
    %192 = math.tanh %191 : vector<8x64xf32>
    %cst_72 = arith.constant 5.000000e-01 : f32
    %193 = vector.broadcast %cst_72 : f32 to vector<8x64xf32>
    %194 = arith.mulf %193, %192 : vector<8x64xf32>
    %cst_73 = arith.constant 5.000000e-01 : f32
    %195 = vector.broadcast %cst_73 : f32 to vector<8x64xf32>
    %196 = arith.addf %194, %195 : vector<8x64xf32>
    %197 = arith.mulf %186, %159 : vector<8x64xf32>
    %198 = arith.mulf %178, %188 : vector<8x64xf32>
    %199 = arith.addf %197, %198 : vector<8x64xf32>
    %200 = math.tanh %199 : vector<8x64xf32>
    %201 = arith.mulf %196, %200 : vector<8x64xf32>
    %202 = arith.index_cast %c4_i32 : i32 to index
    %c0_74 = arith.constant 0 : index
    %c0_75 = arith.constant 0 : index
    %203 = vector.load %arg3[%202, %c0_74, %c0_75] : memref<8x8x64xf32, #tpu.memory_space<vmem>>, vector<1x8x64xf32>
    %204 = vector.shape_cast %203 : vector<1x8x64xf32> to vector<8x64xf32>
    %205 = vector.shape_cast %201 : vector<8x64xf32> to vector<1x8x64xf32>
    tpu.vector_store %arg3[%202, %c0_74, %c0_75], %205 {strides = array<i32>} : memref<8x8x64xf32, #tpu.memory_space<vmem>>, vector<1x8x64xf32>,
    %c5_i32 = arith.constant 5 : i32
    %206 = arith.index_cast %c5_i32 : i32 to index
    %c0_76 = arith.constant 0 : index
    %c0_77 = arith.constant 0 : index
    %207 = vector.load %arg1[%206, %c0_76, %c0_77] : memref<8x8x256xf32, #tpu.memory_space<vmem>>, vector<1x8x256xf32>
    %208 = vector.shape_cast %207 : vector<1x8x256xf32> to vector<8x256xf32>
    %cst_78 = arith.constant dense<0.000000e+00> : vector<8x256xf32>
    %209 = tpu.matmul %201, %3, %cst_78 {dimension_numbers = #tpu.dot_dimension_numbers<[1], [0], [0], [1], [0, 0, 1, 1], [], []>} : vector<8x64xf32>, vector<64x256xf32>, vector<8x256xf32> -> vector<8x256xf32>
    %210 = arith.addf %208, %209 : vector<8x256xf32>
    %211 = vector.extract_strided_slice %210 {offsets = [0, 0], sizes = [8, 64], strides = [1, 1]} : vector<8x256xf32> to vector<8x64xf32>
    %cst_79 = arith.constant 5.000000e-01 : f32
    %212 = vector.broadcast %cst_79 : f32 to vector<8x64xf32>
    %213 = arith.mulf %212, %211 : vector<8x64xf32>
    %214 = math.tanh %213 : vector<8x64xf32>
    %cst_80 = arith.constant 5.000000e-01 : f32
    %215 = vector.broadcast %cst_80 : f32 to vector<8x64xf32>
    %216 = arith.mulf %215, %214 : vector<8x64xf32>
    %cst_81 = arith.constant 5.000000e-01 : f32
    %217 = vector.broadcast %cst_81 : f32 to vector<8x64xf32>
    %218 = arith.addf %216, %217 : vector<8x64xf32>
    %219 = vector.extract_strided_slice %210 {offsets = [0, 64], sizes = [8, 64], strides = [1, 1]} : vector<8x256xf32> to vector<8x64xf32>
    %cst_82 = arith.constant 5.000000e-01 : f32
    %220 = vector.broadcast %cst_82 : f32 to vector<8x64xf32>
    %221 = arith.mulf %220, %219 : vector<8x64xf32>
    %222 = math.tanh %221 : vector<8x64xf32>
    %cst_83 = arith.constant 5.000000e-01 : f32
    %223 = vector.broadcast %cst_83 : f32 to vector<8x64xf32>
    %224 = arith.mulf %223, %222 : vector<8x64xf32>
    %cst_84 = arith.constant 5.000000e-01 : f32
    %225 = vector.broadcast %cst_84 : f32 to vector<8x64xf32>
    %226 = arith.addf %224, %225 : vector<8x64xf32>
    %227 = vector.extract_strided_slice %210 {offsets = [0, 128], sizes = [8, 64], strides = [1, 1]} : vector<8x256xf32> to vector<8x64xf32>
    %228 = math.tanh %227 : vector<8x64xf32>
    %229 = vector.extract_strided_slice %210 {offsets = [0, 192], sizes = [8, 64], strides = [1, 1]} : vector<8x256xf32> to vector<8x64xf32>
    %cst_85 = arith.constant 5.000000e-01 : f32
    %230 = vector.broadcast %cst_85 : f32 to vector<8x64xf32>
    %231 = arith.mulf %230, %229 : vector<8x64xf32>
    %232 = math.tanh %231 : vector<8x64xf32>
    %cst_86 = arith.constant 5.000000e-01 : f32
    %233 = vector.broadcast %cst_86 : f32 to vector<8x64xf32>
    %234 = arith.mulf %233, %232 : vector<8x64xf32>
    %cst_87 = arith.constant 5.000000e-01 : f32
    %235 = vector.broadcast %cst_87 : f32 to vector<8x64xf32>
    %236 = arith.addf %234, %235 : vector<8x64xf32>
    %237 = arith.mulf %226, %199 : vector<8x64xf32>
    %238 = arith.mulf %218, %228 : vector<8x64xf32>
    %239 = arith.addf %237, %238 : vector<8x64xf32>
    %240 = math.tanh %239 : vector<8x64xf32>
    %241 = arith.mulf %236, %240 : vector<8x64xf32>
    %242 = arith.index_cast %c5_i32 : i32 to index
    %c0_88 = arith.constant 0 : index
    %c0_89 = arith.constant 0 : index
    %243 = vector.load %arg3[%242, %c0_88, %c0_89] : memref<8x8x64xf32, #tpu.memory_space<vmem>>, vector<1x8x64xf32>
    %244 = vector.shape_cast %243 : vector<1x8x64xf32> to vector<8x64xf32>
    %245 = vector.shape_cast %241 : vector<8x64xf32> to vector<1x8x64xf32>
    tpu.vector_store %arg3[%242, %c0_88, %c0_89], %245 {strides = array<i32>} : memref<8x8x64xf32, #tpu.memory_space<vmem>>, vector<1x8x64xf32>,
    %c6_i32 = arith.constant 6 : i32
    %246 = arith.index_cast %c6_i32 : i32 to index
    %c0_90 = arith.constant 0 : index
    %c0_91 = arith.constant 0 : index
    %247 = vector.load %arg1[%246, %c0_90, %c0_91] : memref<8x8x256xf32, #tpu.memory_space<vmem>>, vector<1x8x256xf32>
    %248 = vector.shape_cast %247 : vector<1x8x256xf32> to vector<8x256xf32>
    %cst_92 = arith.constant dense<0.000000e+00> : vector<8x256xf32>
    %249 = tpu.matmul %241, %3, %cst_92 {dimension_numbers = #tpu.dot_dimension_numbers<[1], [0], [0], [1], [0, 0, 1, 1], [], []>} : vector<8x64xf32>, vector<64x256xf32>, vector<8x256xf32> -> vector<8x256xf32>
    %250 = arith.addf %248, %249 : vector<8x256xf32>
    %251 = vector.extract_strided_slice %250 {offsets = [0, 0], sizes = [8, 64], strides = [1, 1]} : vector<8x256xf32> to vector<8x64xf32>
    %cst_93 = arith.constant 5.000000e-01 : f32
    %252 = vector.broadcast %cst_93 : f32 to vector<8x64xf32>
    %253 = arith.mulf %252, %251 : vector<8x64xf32>
    %254 = math.tanh %253 : vector<8x64xf32>
    %cst_94 = arith.constant 5.000000e-01 : f32
    %255 = vector.broadcast %cst_94 : f32 to vector<8x64xf32>
    %256 = arith.mulf %255, %254 : vector<8x64xf32>
    %cst_95 = arith.constant 5.000000e-01 : f32
    %257 = vector.broadcast %cst_95 : f32 to vector<8x64xf32>
    %258 = arith.addf %256, %257 : vector<8x64xf32>
    %259 = vector.extract_strided_slice %250 {offsets = [0, 64], sizes = [8, 64], strides = [1, 1]} : vector<8x256xf32> to vector<8x64xf32>
    %cst_96 = arith.constant 5.000000e-01 : f32
    %260 = vector.broadcast %cst_96 : f32 to vector<8x64xf32>
    %261 = arith.mulf %260, %259 : vector<8x64xf32>
    %262 = math.tanh %261 : vector<8x64xf32>
    %cst_97 = arith.constant 5.000000e-01 : f32
    %263 = vector.broadcast %cst_97 : f32 to vector<8x64xf32>
    %264 = arith.mulf %263, %262 : vector<8x64xf32>
    %cst_98 = arith.constant 5.000000e-01 : f32
    %265 = vector.broadcast %cst_98 : f32 to vector<8x64xf32>
    %266 = arith.addf %264, %265 : vector<8x64xf32>
    %267 = vector.extract_strided_slice %250 {offsets = [0, 128], sizes = [8, 64], strides = [1, 1]} : vector<8x256xf32> to vector<8x64xf32>
    %268 = math.tanh %267 : vector<8x64xf32>
    %269 = vector.extract_strided_slice %250 {offsets = [0, 192], sizes = [8, 64], strides = [1, 1]} : vector<8x256xf32> to vector<8x64xf32>
    %cst_99 = arith.constant 5.000000e-01 : f32
    %270 = vector.broadcast %cst_99 : f32 to vector<8x64xf32>
    %271 = arith.mulf %270, %269 : vector<8x64xf32>
    %272 = math.tanh %271 : vector<8x64xf32>
    %cst_100 = arith.constant 5.000000e-01 : f32
    %273 = vector.broadcast %cst_100 : f32 to vector<8x64xf32>
    %274 = arith.mulf %273, %272 : vector<8x64xf32>
    %cst_101 = arith.constant 5.000000e-01 : f32
    %275 = vector.broadcast %cst_101 : f32 to vector<8x64xf32>
    %276 = arith.addf %274, %275 : vector<8x64xf32>
    %277 = arith.mulf %266, %239 : vector<8x64xf32>
    %278 = arith.mulf %258, %268 : vector<8x64xf32>
    %279 = arith.addf %277, %278 : vector<8x64xf32>
    %280 = math.tanh %279 : vector<8x64xf32>
    %281 = arith.mulf %276, %280 : vector<8x64xf32>
    %282 = arith.index_cast %c6_i32 : i32 to index
    %c0_102 = arith.constant 0 : index
    %c0_103 = arith.constant 0 : index
    %283 = vector.load %arg3[%282, %c0_102, %c0_103] : memref<8x8x64xf32, #tpu.memory_space<vmem>>, vector<1x8x64xf32>
    %284 = vector.shape_cast %283 : vector<1x8x64xf32> to vector<8x64xf32>
    %285 = vector.shape_cast %281 : vector<8x64xf32> to vector<1x8x64xf32>
    tpu.vector_store %arg3[%282, %c0_102, %c0_103], %285 {strides = array<i32>} : memref<8x8x64xf32, #tpu.memory_space<vmem>>, vector<1x8x64xf32>,
    %c7_i32 = arith.constant 7 : i32
    %286 = arith.index_cast %c7_i32 : i32 to index
    %c0_104 = arith.constant 0 : index
    %c0_105 = arith.constant 0 : index
    %287 = vector.load %arg1[%286, %c0_104, %c0_105] : memref<8x8x256xf32, #tpu.memory_space<vmem>>, vector<1x8x256xf32>
    %288 = vector.shape_cast %287 : vector<1x8x256xf32> to vector<8x256xf32>
    %cst_106 = arith.constant dense<0.000000e+00> : vector<8x256xf32>
    %289 = tpu.matmul %281, %3, %cst_106 {dimension_numbers = #tpu.dot_dimension_numbers<[1], [0], [0], [1], [0, 0, 1, 1], [], []>} : vector<8x64xf32>, vector<64x256xf32>, vector<8x256xf32> -> vector<8x256xf32>
    %290 = arith.addf %288, %289 : vector<8x256xf32>
    %291 = vector.extract_strided_slice %290 {offsets = [0, 0], sizes = [8, 64], strides = [1, 1]} : vector<8x256xf32> to vector<8x64xf32>
    %cst_107 = arith.constant 5.000000e-01 : f32
    %292 = vector.broadcast %cst_107 : f32 to vector<8x64xf32>
    %293 = arith.mulf %292, %291 : vector<8x64xf32>
    %294 = math.tanh %293 : vector<8x64xf32>
    %cst_108 = arith.constant 5.000000e-01 : f32
    %295 = vector.broadcast %cst_108 : f32 to vector<8x64xf32>
    %296 = arith.mulf %295, %294 : vector<8x64xf32>
    %cst_109 = arith.constant 5.000000e-01 : f32
    %297 = vector.broadcast %cst_109 : f32 to vector<8x64xf32>
    %298 = arith.addf %296, %297 : vector<8x64xf32>
    %299 = vector.extract_strided_slice %290 {offsets = [0, 64], sizes = [8, 64], strides = [1, 1]} : vector<8x256xf32> to vector<8x64xf32>
    %cst_110 = arith.constant 5.000000e-01 : f32
    %300 = vector.broadcast %cst_110 : f32 to vector<8x64xf32>
    %301 = arith.mulf %300, %299 : vector<8x64xf32>
    %302 = math.tanh %301 : vector<8x64xf32>
    %cst_111 = arith.constant 5.000000e-01 : f32
    %303 = vector.broadcast %cst_111 : f32 to vector<8x64xf32>
    %304 = arith.mulf %303, %302 : vector<8x64xf32>
    %cst_112 = arith.constant 5.000000e-01 : f32
    %305 = vector.broadcast %cst_112 : f32 to vector<8x64xf32>
    %306 = arith.addf %304, %305 : vector<8x64xf32>
    %307 = vector.extract_strided_slice %290 {offsets = [0, 128], sizes = [8, 64], strides = [1, 1]} : vector<8x256xf32> to vector<8x64xf32>
    %308 = math.tanh %307 : vector<8x64xf32>
    %309 = vector.extract_strided_slice %290 {offsets = [0, 192], sizes = [8, 64], strides = [1, 1]} : vector<8x256xf32> to vector<8x64xf32>
    %cst_113 = arith.constant 5.000000e-01 : f32
    %310 = vector.broadcast %cst_113 : f32 to vector<8x64xf32>
    %311 = arith.mulf %310, %309 : vector<8x64xf32>
    %312 = math.tanh %311 : vector<8x64xf32>
    %cst_114 = arith.constant 5.000000e-01 : f32
    %313 = vector.broadcast %cst_114 : f32 to vector<8x64xf32>
    %314 = arith.mulf %313, %312 : vector<8x64xf32>
    %cst_115 = arith.constant 5.000000e-01 : f32
    %315 = vector.broadcast %cst_115 : f32 to vector<8x64xf32>
    %316 = arith.addf %314, %315 : vector<8x64xf32>
    %317 = arith.mulf %306, %279 : vector<8x64xf32>
    %318 = arith.mulf %298, %308 : vector<8x64xf32>
    %319 = arith.addf %317, %318 : vector<8x64xf32>
    %320 = math.tanh %319 : vector<8x64xf32>
    %321 = arith.mulf %316, %320 : vector<8x64xf32>
    %322 = arith.index_cast %c7_i32 : i32 to index
    %c0_116 = arith.constant 0 : index
    %c0_117 = arith.constant 0 : index
    %323 = vector.load %arg3[%322, %c0_116, %c0_117] : memref<8x8x64xf32, #tpu.memory_space<vmem>>, vector<1x8x64xf32>
    %324 = vector.shape_cast %323 : vector<1x8x64xf32> to vector<8x64xf32>
    %325 = vector.shape_cast %321 : vector<8x64xf32> to vector<1x8x64xf32>
    tpu.vector_store %arg3[%322, %c0_116, %c0_117], %325 {strides = array<i32>} : memref<8x8x64xf32, #tpu.memory_space<vmem>>, vector<1x8x64xf32>,
    %c8_i32 = arith.constant 8 : i32
    %c0_118 = arith.constant 0 : index
    %c0_119 = arith.constant 0 : index
    %326 = vector.load %arg4[%c0_118, %c0_119] : memref<8x64xf32, #tpu.memory_space<vmem>>, vector<8x64xf32>
    tpu.vector_store %arg4[%c0_118, %c0_119], %321 {strides = array<i32>} : memref<8x64xf32, #tpu.memory_space<vmem>>, vector<8x64xf32>,
    %c0_120 = arith.constant 0 : index
    %c0_121 = arith.constant 0 : index
    %327 = vector.load %arg5[%c0_120, %c0_121] : memref<8x64xf32, #tpu.memory_space<vmem>>, vector<8x64xf32>
    tpu.vector_store %arg5[%c0_120, %c0_121], %319 {strides = array<i32>} : memref<8x64xf32, #tpu.memory_space<vmem>>, vector<8x64xf32>,
    return
  }
  func.func @transform_0(%arg0: i32) -> (i32, i32, i32) {
    %c0_i32 = arith.constant 0 : i32
    %c0_i32_0 = arith.constant 0 : i32
    %c0_i32_1 = arith.constant 0 : i32
    return %arg0, %c0_i32, %c0_i32_0 : i32, i32, i32
  }
  func.func @transform_1(%arg0: i32) -> (i32, i32) {
    %c0_i32 = arith.constant 0 : i32
    %c0_i32_0 = arith.constant 0 : i32
    %c0_i32_1 = arith.constant 0 : i32
    return %c0_i32, %c0_i32_0 : i32, i32
  }
  func.func @transform_2(%arg0: i32) -> (i32, i32, i32) {
    %c0_i32 = arith.constant 0 : i32
    %c0_i32_0 = arith.constant 0 : i32
    %c0_i32_1 = arith.constant 0 : i32
    return %arg0, %c0_i32, %c0_i32_0 : i32, i32, i32
  }
}

module attributes {stable_mosaic.version = 11 : i64} {
  func.func @fc_head_kernel(%arg0: i32, %arg1: memref<64x64xf32, #tpu.memory_space<vmem>>, %arg2: memref<64x32xf32, #tpu.memory_space<vmem>>, %arg3: memref<1x32xf32, #tpu.memory_space<vmem>>, %arg4: memref<1x32xf32, #tpu.memory_space<vmem>>, %arg5: memref<1x1xf32, #tpu.memory_space<vmem>>, %arg6: memref<64x1xf32, #tpu.memory_space<vmem>>) attributes {dimension_semantics = [#tpu.dimension_semantics<parallel>], iteration_bounds = array<i64: 1>, scalar_prefetch = 0 : i64, scratch_operands = 0 : i64, tpu.core_type = #tpu.core_type<tc>, window_params = [{transform_indices = @transform_0, window_bounds = array<i64: 64, 64>}, {pipeline_mode = #tpu.pipeline_mode<synchronous>, transform_indices = @transform_1, window_bounds = array<i64: 64, 32>}, {pipeline_mode = #tpu.pipeline_mode<synchronous>, transform_indices = @transform_2, window_bounds = array<i64: 1, 32>}, {pipeline_mode = #tpu.pipeline_mode<synchronous>, transform_indices = @transform_3, window_bounds = array<i64: 1, 32>}, {pipeline_mode = #tpu.pipeline_mode<synchronous>, transform_indices = @transform_4, window_bounds = array<i64: 1, 1>}, {transform_indices = @transform_5, window_bounds = array<i64: 64, 1>}]} {
    %c0 = arith.constant 0 : index
    %c0_0 = arith.constant 0 : index
    %0 = vector.load %arg1[%c0, %c0_0] : memref<64x64xf32, #tpu.memory_space<vmem>>, vector<64x64xf32>
    %c0_1 = arith.constant 0 : index
    %c0_2 = arith.constant 0 : index
    %1 = vector.load %arg2[%c0_1, %c0_2] : memref<64x32xf32, #tpu.memory_space<vmem>>, vector<64x32xf32>
    %cst = arith.constant dense<0.000000e+00> : vector<64x32xf32>
    %2 = tpu.matmul %0, %1, %cst {dimension_numbers = #tpu.dot_dimension_numbers<[1], [0], [0], [1], [0, 0, 1, 1], [], []>} : vector<64x64xf32>, vector<64x32xf32>, vector<64x32xf32> -> vector<64x32xf32>
    %c0_3 = arith.constant 0 : index
    %c0_4 = arith.constant 0 : index
    %3 = vector.load %arg3[%c0_3, %c0_4] : memref<1x32xf32, #tpu.memory_space<vmem>>, vector<1x32xf32>
    %4 = vector.broadcast %3 : vector<1x32xf32> to vector<64x32xf32>
    %5 = arith.addf %2, %4 : vector<64x32xf32>
    %c0_5 = arith.constant 0 : index
    %c0_6 = arith.constant 0 : index
    %6 = vector.load %arg4[%c0_5, %c0_6] : memref<1x32xf32, #tpu.memory_space<vmem>>, vector<1x32xf32>
    %7 = vector.broadcast %6 : vector<1x32xf32> to vector<64x32xf32>
    %8 = arith.mulf %5, %7 : vector<64x32xf32>
    %cst_7 = arith.constant dense<0.000000e+00> : vector<64xf32>
    %9 = vector.multi_reduction <add>, %8, %cst_7 [1] : vector<64x32xf32> to vector<64xf32>
    %10 = vector.shape_cast %9 : vector<64xf32> to vector<64x1xf32>
    %c0_8 = arith.constant 0 : index
    %c0_9 = arith.constant 0 : index
    %11 = vector.load %arg5[%c0_8, %c0_9] : memref<1x1xf32, #tpu.memory_space<vmem>>, vector<1x1xf32>
    %12 = vector.broadcast %11 : vector<1x1xf32> to vector<64x1xf32>
    %13 = arith.addf %10, %12 : vector<64x1xf32>
    %c0_10 = arith.constant 0 : index
    %c0_11 = arith.constant 0 : index
    %14 = vector.load %arg6[%c0_10, %c0_11] : memref<64x1xf32, #tpu.memory_space<vmem>>, vector<64x1xf32>
    tpu.vector_store %arg6[%c0_10, %c0_11], %13 {strides = array<i32>} : memref<64x1xf32, #tpu.memory_space<vmem>>, vector<64x1xf32>,
    return
  }
  func.func @transform_0(%arg0: i32) -> (i32, i32) {
    %c0_i32 = arith.constant 0 : i32
    %c0_i32_0 = arith.constant 0 : i32
    return %arg0, %c0_i32 : i32, i32
  }
  func.func @transform_1(%arg0: i32) -> (i32, i32) {
    %c0_i32 = arith.constant 0 : i32
    %c0_i32_0 = arith.constant 0 : i32
    %c0_i32_1 = arith.constant 0 : i32
    return %c0_i32, %c0_i32_0 : i32, i32
  }
  func.func @transform_2(%arg0: i32) -> (i32, i32) {
    %c0_i32 = arith.constant 0 : i32
    %c0_i32_0 = arith.constant 0 : i32
    %c0_i32_1 = arith.constant 0 : i32
    return %c0_i32, %c0_i32_0 : i32, i32
  }
  func.func @transform_3(%arg0: i32) -> (i32, i32) {
    %c0_i32 = arith.constant 0 : i32
    %c0_i32_0 = arith.constant 0 : i32
    %c0_i32_1 = arith.constant 0 : i32
    return %c0_i32, %c0_i32_0 : i32, i32
  }
  func.func @transform_4(%arg0: i32) -> (i32, i32) {
    %c0_i32 = arith.constant 0 : i32
    %c0_i32_0 = arith.constant 0 : i32
    %c0_i32_1 = arith.constant 0 : i32
    return %c0_i32, %c0_i32_0 : i32, i32
  }
  func.func @transform_5(%arg0: i32) -> (i32, i32) {
    %c0_i32 = arith.constant 0 : i32
    %c0_i32_0 = arith.constant 0 : i32
    return %arg0, %c0_i32 : i32, i32
  }
}

</mosaic_0001>

<bundles_post_ra>
// kernel: _lambda_.5
= control target key start
LH: loop header
LB: loop body
LE: loop exit
PB: predicated region body
PF: predicated region fallthrough
CT: control target
= control target key end

     0   :  { %vm45_vm0 = vcmask 523264   ;;  %vm190_vm1 = vcmask 261120   ;;  %vm230_vm2 = vcmask 7168   ;;  %s449_s1 = inlined_call_operand.vmem [shape: f32[64,32], index: 1, kind: input, shape index: {}]   ;;  %s450_s0 = inlined_call_operand.vmem [shape: f32[64,64], index: 0, kind: input, shape index: {}]   ;;  %s451_s4 = inlined_call_operand.<no memory space> [shape: f32[1,1], index: 4, kind: input, shape index: {}]   ;;  %s452_s2 = inlined_call_operand.vmem [shape: f32[1,32], index: 2, kind: input, shape index: {}]   ;;  %s453_s3 = inlined_call_operand.vmem [shape: f32[1,32], index: 3, kind: input, shape index: {}]   ;;  %s454_s5 = inlined_call_operand.vmem [shape: f32[64,1], index: 5, kind: output, shape index: {}]  }
   0x1   :  { %v37_v0 = vld [vmem:[%s449_s1 + $0x38] sm:$0xff]  ;;  %v36_v1 = vld [vmem:[%s449_s1 + $0x30] sm:$0xff]  ;;  %v35_v2 = vld [vmem:[%s449_s1 + $0x28] sm:$0xff]  ;;  %v10_v16 = vstv %s451_s4 }
   0x2   :  { %270 = vmatprep.subr.mxu0 %v37_v0  ;;  %298 = vmatprep.subr.mxu1 %v37_v0  ;;  %v34_v3 = vld [vmem:[%s449_s1 + $0x20] sm:$0xff]  ;;  %v33_v4 = vld [vmem:[%s449_s1 + $0x18] sm:$0xff]  ;;  %v32_v5 = vld [vmem:[%s449_s1 + $0x10] sm:$0xff]  ;;  %11 = vst [vmem:[#allocation2] sm:$0x1] %v10_v16 }
   0x3   :  { %271 = vmatpush3.msra.mxu0 %v37_v0  ;;  %306 = vmatpush3.msra.mxu1 %v37_v0  ;;  %v31_v6 = vld [vmem:[%s449_s1 + $0x8] sm:$0xff]  ;;  %v30_v7 = vld [vmem:[%s449_s1] sm:$0xff]  ;;  %v24_v12 = vld [vmem:[%s450_s0 + $0x10] sm:$0xff] }
   0x4   :  { %272 = vmatprep.subr.mxu0 %v36_v1  ;;  %299 = vmatprep.subr.mxu1 %v36_v1  ;;  %v22_v8 = vld [vmem:[%s450_s0] sm:$0xff]  ;;  %v23_v10 = vld [vmem:[%s450_s0 + $0x8] sm:$0xff]  ;;  %v28_v13 = vld [vmem:[%s450_s0 + $0x30] sm:$0xff] }
   0x5   :  { %273 = vmatpush3.msra.mxu0 %v36_v1  ;;  %307 = vmatpush3.msra.mxu1 %v36_v1  ;;  %v26_v9 = vld [vmem:[%s450_s0 + $0x20] sm:$0xff]  ;;  %v27_v11 = vld [vmem:[%s450_s0 + $0x28] sm:$0xff]  ;;  %v25_v14 = vld [vmem:[%s450_s0 + $0x18] sm:$0xff] }
   0x6   :  { %274 = vmatprep.subr.mxu0 %v35_v2  ;;  %300 = vmatprep.subr.mxu1 %v35_v2  ;;  %v29_v15 = vld [vmem:[%s450_s0 + $0x38] sm:$0xff]  ;;  %v243_v17 = vld [vmem:[%s452_s2] ss:$0 sm:$0xff] }
   0x7   :  { %275 = vmatpush3.msra.mxu0 %v35_v2  ;;  %308 = vmatpush3.msra.mxu1 %v35_v2  ;;  %v252_v20 = vld [vmem:[%s453_s3] ss:$0 sm:$0xff] }
   0x8   :  { %276 = vmatprep.subr.mxu0 %v34_v3  ;;  %301 = vmatprep.subr.mxu1 %v34_v3 }
   0x9   :  { %277 = vmatpush3.msra.mxu0 %v34_v3  ;;  %309 = vmatpush3.msra.mxu1 %v34_v3  ;;  %v253_v51 = vld [vmem:[#allocation2] ss:$0 sm:$0xff] }
   0xa   :  { %278 = vmatprep.subr.mxu0 %v33_v4  ;;  %302 = vmatprep.subr.mxu1 %v33_v4 }
   0xb   :  { %279 = vmatpush3.msra.mxu0 %v33_v4  ;;  %310 = vmatpush3.msra.mxu1 %v33_v4 }
   0xc   :  { %280 = vmatprep.subr.mxu0 %v32_v5  ;;  %303 = vmatprep.subr.mxu1 %v32_v5 }
   0xd   :  { %281 = vmatpush3.msra.mxu0 %v32_v5  ;;  %311 = vmatpush3.msra.mxu1 %v32_v5 }
   0xe   :  { %282 = vmatprep.subr.mxu0 %v31_v6  ;;  %304 = vmatprep.subr.mxu1 %v31_v6 }
   0xf   :  { %283 = vmatpush3.msra.mxu0 %v31_v6  ;;  %312 = vmatpush3.msra.mxu1 %v31_v6 }
  0x10   :  { %284 = vmatprep.subr.mxu0 %v30_v7  ;;  %305 = vmatprep.subr.mxu1 %v30_v7 }
  0x11   :  { %285 = vmatpush3.msra.mxu0 %v30_v7  ;;  %313 = vmatpush3.msra.mxu1 %v30_v7 }
  0x12   :  { %286 = vmatprep.mubr.msk.f32.mxu0 %vm45_vm0, %v22_v8  ;;  %292 = vmatprep.mubr.msk.f32.mxu1 %vm45_vm0, %v26_v9 }
  0x13   :  { %287 = vmatmul.mubr.msk.f32.vlgmr.msra.gmra.mxu0 %vm45_vm0, %v23_v10  ;;  %293 = vmatmul.mubr.msk.f32.vlgmr.msra.gmra.mxu1 %vm45_vm0, %v27_v11 }
  0x14   :  { %289 = vmatprep.mubr.msk.f32.mxu0 %vm45_vm0, %v24_v12  ;;  %295 = vmatprep.mubr.msk.f32.mxu1 %vm45_vm0, %v28_v13 }
  0x17   :  { %290 = vmatmul.mubr.msk.f32.gmra.mxu0 %vm45_vm0, %v25_v14  ;;  %296 = vmatmul.mubr.msk.f32.gmra.mxu1 %vm45_vm0, %v29_v15 }
  0xd3   :  { %v288_v18 = vpop.f32.mrf.mxu0  ;;  %v294_v19 = vpop.f32.mrf.mxu1 }
  0xd4   :  { %v142_v21 = vadd.f32 %v288_v18, %v243_v17  ;;  %v162_v22 = vadd.f32 %v294_v19, %v243_v17 }
  0xd5   :  { %v136_v23 = vpop.f32.mrf.mxu0  ;;  %v156_v24 = vpop.f32.mrf.mxu1 }
  0xd6   :  { %v137_v25 = vadd.f32 %v243_v17, %v136_v23  ;;  %v187_v26 = vmul.f32 %v252_v20, %v162_v22  ;;  %v183_v27 = vmul.f32 %v252_v20, %v142_v21  ;;  %v157_v28 = vadd.f32 %v243_v17, %v156_v24 }
  0xd7   :  { %v291_v29 = vpop.f32.mrf.mxu0  ;;  %v297_v30 = vpop.f32.mrf.mxu1 }
  0xd8   :  { %v152_v31 = vadd.f32 %v291_v29, %v243_v17  ;;  %v206_v32 = vsel %vm190_vm1, %v187_v26, 0.0  ;;  %v194_v33 = vsel %vm190_vm1, %v183_v27, 0.0  ;;  %v182_v36 = vmul.f32 %v252_v20, %v137_v25 }
  0xd9   :  { %207 = vadd.xlane.f32.xlu1 %v206_v32  ;;  %195 = vadd.xlane.f32.xlu0 %v194_v33  ;;  %v146_v34 = vpop.f32.mrf.mxu0  ;;  %v166_v35 = vpop.f32.mrf.mxu1  ;;  %v172_v39 = vadd.f32 %v297_v30, %v243_v17  ;;  %v186_v40 = vmul.f32 %v252_v20, %v157_v28 }
  0xda   :  { %v147_v37 = vadd.f32 %v243_v17, %v146_v34  ;;  %v185_v38 = vmul.f32 %v252_v20, %v152_v31  ;;  %v167_v41 = vadd.f32 %v243_v17, %v166_v35  ;;  %v191_v43 = vsel %vm190_vm1, %v182_v36, 0.0 }
  0xdb   :  { %v203_v46 = vsel %vm190_vm1, %v186_v40, 0.0  ;;  %v189_v47 = vmul.f32 %v252_v20, %v172_v39 }
  0xdc   :  { %v200_v42 = vsel %vm190_vm1, %v185_v38, 0.0  ;;  %v184_v44 = vmul.f32 %v252_v20, %v147_v37  ;;  %v188_v48 = vmul.f32 %v252_v20, %v167_v41 }
  0xdd   :  { %201 = vadd.xlane.f32.xlu1 %v200_v42  ;;  %192 = vadd.xlane.f32.xlu0 %v191_v43  ;;  %v212_v49 = vsel %vm190_vm1, %v189_v47, 0.0 }
  0xde   :  { %v197_v45 = vsel %vm190_vm1, %v184_v44, 0.0  ;;  %v209_v50 = vsel %vm190_vm1, %v188_v48, 0.0 }
  0xe1   :  { %198 = vadd.xlane.f32.xlu1 %v197_v45  ;;  %204 = vadd.xlane.f32.xlu0 %v203_v46 }
  0xe5   :  { %213 = vadd.xlane.f32.xlu1 %v212_v49  ;;  %210 = vadd.xlane.f32.xlu0 %v209_v50 }
 0x162   :  { %v208_v52 = vpop.xlane.xlu1 %207  ;;  %v196_v53 = vpop.xlane.xlu0 %195 }
 0x163   :  { %v227_v54 = vadd.f32 %v253_v51, %v208_v52  ;;  %v223_v55 = vadd.f32 %v253_v51, %v196_v53 }
 0x165   :  { %236 = vst.msk [vmem:[%s454_s5 + $0x28] sm:$0xff] %vm230_vm2, %v227_v54  ;;  %232 = vst.msk [vmem:[%s454_s5 + $0x8] sm:$0xff] %vm230_vm2, %v223_v55 }
 0x166   :  { %v202_v56 = vpop.xlane.xlu1 %201  ;;  %v193_v57 = vpop.xlane.xlu0 %192 }
 0x167   :  { %v225_v58 = vadd.f32 %v253_v51, %v202_v56  ;;  %v222_v59 = vadd.f32 %v253_v51, %v193_v57 }
 0x169   :  { %234 = vst.msk [vmem:[%s454_s5 + $0x18] sm:$0xff] %vm230_vm2, %v225_v58  ;;  %231 = vst.msk [vmem:[%s454_s5] sm:$0xff] %vm230_vm2, %v222_v59 }
 0x16a   :  { %v199_v60 = vpop.xlane.xlu1 %198  ;;  %v205_v61 = vpop.xlane.xlu0 %204 }
 0x16b   :  { %v224_v62 = vadd.f32 %v253_v51, %v199_v60  ;;  %v226_v63 = vadd.f32 %v253_v51, %v205_v61 }
 0x16d   :  { %233 = vst.msk [vmem:[%s454_s5 + $0x10] sm:$0xff] %vm230_vm2, %v224_v62  ;;  %235 = vst.msk [vmem:[%s454_s5 + $0x20] sm:$0xff] %vm230_vm2, %v226_v63 }
 0x16e   :  { %v214_v0 = vpop.xlane.xlu1 %213  ;;  %v211_v1 = vpop.xlane.xlu0 %210 }
 0x16f   :  { %v229_v2 = vadd.f32 %v253_v51, %v214_v0  ;;  %v228_v3 = vadd.f32 %v253_v51, %v211_v1 }
 0x171   :  { %238 = vst.msk [vmem:[%s454_s5 + $0x38] sm:$0xff] %vm230_vm2, %v229_v2  ;;  %237 = vst.msk [vmem:[%s454_s5 + $0x30] sm:$0xff] %vm230_vm2, %v228_v3 }

// kernel: _lambda_.3
= control target key start
LH: loop header
LB: loop body
LE: loop exit
PB: predicated region body
PF: predicated region fallthrough
CT: control target
= control target key end

     0   :  { %vm63_vm0 = vcmask 1044480   ;;  %v218_v3 = vmov 0.0   ;;  %vm38_vm1 = vcmask 105472   ;;  %v28_v13 = vlaneseq  ;;  %s334_s1 = inlined_call_operand.vmem [shape: f32[13,256], index: 1, kind: input, shape index: {}]   ;;  %s335_s0 = inlined_call_operand.vmem [shape: f32[64,13], index: 0, kind: input, shape index: {}]   ;;  %s336_s2 = inlined_call_operand.vmem [shape: f32[1,256], index: 2, kind: input, shape index: {}]   ;;  %s337_s3 = inlined_call_operand.vmem [shape: f32[64,256], index: 3, kind: output, shape index: {}]  }
   0x1   :  { %v25_v0 = vld [vmem:[%s334_s1 + $0x18] sm:$0x1f]  ;;  %v24_v1 = vld [vmem:[%s334_s1 + $0x10] sm:$0x1f]  ;;  %v23_v2 = vld [vmem:[%s334_s1 + $0x8] sm:$0xff]  ;;  %134 = vmatprep.mubr.f32.mxu0 %v218_v3  ;;  %158 = vmatprep.mubr.f32.mxu1 %v218_v3 }
   0x2   :  { %203 = vmatprep.subr.msk.mxu0 %vm63_vm0, %v25_v0  ;;  %213 = vmatprep.subr.msk.mxu1 %vm63_vm0, %v25_v0  ;;  %v22_v4 = vld [vmem:[%s334_s1] sm:$0xff]  ;;  %v15_v7 = vld [vmem:[%s335_s0 + $0x8] sm:$0xff]  ;;  %v16_v9 = vld [vmem:[%s335_s0 + $0x10] sm:$0xff]  ;;  %v29_v14 = vshrl.u32 %v28_v13, 7 }
   0x3   :  { %204 = vmatpush1.msk.msra.mxu0 %vm63_vm0, %v24_v1  ;;  %215 = vmatpush1.msk.msra.mxu1 %vm63_vm0, %v24_v1  ;;  %v14_v5 = vld [vmem:[%s335_s0] sm:$0xff]  ;;  %v19_v8 = vld [vmem:[%s335_s0 + $0x28] sm:$0xff]  ;;  %v20_v10 = vld [vmem:[%s335_s0 + $0x30] sm:$0xff] }
   0x4   :  { %v18_v6 = vld [vmem:[%s335_s0 + $0x20] sm:$0xff]  ;;  %100 = vmatprep.subr.mxu0 %v23_v2  ;;  %214 = vmatprep.subr.mxu1 %v23_v2  ;;  %v17_v11 = vld [vmem:[%s335_s0 + $0x18] sm:$0xff]  ;;  %v30_v15 = vsub.s32 0, %v29_v14  ;;  %v34_v17 = vsub.s32 1, %v29_v14 }
   0x5   :  { %101 = vmatpush1.msra.mxu0 %v22_v4  ;;  %216 = vmatpush1.msra.mxu1 %v22_v4  ;;  %v21_v12 = vld [vmem:[%s335_s0 + $0x38] sm:$0xff]  ;;  %v26_v16 = vld [vmem:[%s336_s2] sm:$0x3] }
   0x6   :  { %205 = vmatmul.mubr.msk.f32.vlgmr.msra.gmra.mxu0 %vm38_vm1, %v14_v5  ;;  %209 = vmatmul.mubr.msk.f32.vlgmr.msra.gmra.mxu1 %vm38_vm1, %v18_v6  ;;  %v31_v18 = vrot.slane %v26_v16, %v30_v15  ;;  %v35_v19 = vrot.slane %v26_v16, %v34_v17 }
   0x7   :  { %140 = vmatprep.mubr.f32.mxu0 %v218_v3  ;;  %164 = vmatprep.mubr.f32.mxu1 %v218_v3 }
   0xa   :  { %206 = vmatmul.mubr.msk.f32.gmra.mxu0 %vm38_vm1, %v15_v7  ;;  %210 = vmatmul.mubr.msk.f32.gmra.mxu1 %vm38_vm1, %v19_v8 }
   0xb   :  { %146 = vmatprep.mubr.f32.mxu0 %v218_v3  ;;  %170 = vmatprep.mubr.f32.mxu1 %v218_v3 }
   0xe   :  { %207 = vmatmul.mubr.msk.f32.gmra.mxu0 %vm38_vm1, %v16_v9  ;;  %211 = vmatmul.mubr.msk.f32.gmra.mxu1 %vm38_vm1, %v20_v10 }
   0xf   :  { %152 = vmatprep.mubr.f32.mxu0 %v218_v3  ;;  %176 = vmatprep.mubr.f32.mxu1 %v218_v3 }
  0x12   :  { %208 = vmatmul.mubr.msk.f32.gmra.mxu0 %vm38_vm1, %v17_v11  ;;  %212 = vmatmul.mubr.msk.f32.gmra.mxu1 %vm38_vm1, %v21_v12 }
  0xc6   :  { %v136_v20 = vpop.f32.mrf.mxu0  ;;  %v160_v21 = vpop.f32.mrf.mxu1 }
  0xc7   :  { %v137_v22 = vadd.f32 %v136_v20, %v31_v18  ;;  %v161_v23 = vadd.f32 %v160_v21, %v31_v18 }
  0xc8   :  { %v138_v24 = vpop.f32.mrf.mxu0  ;;  %v162_v25 = vpop.f32.mrf.mxu1 }
  0xc9   :  { %183 = vst [vmem:[%s337_s3] sm:$0xff] %v137_v22  ;;  %191 = vst [vmem:[%s337_s3 + $0x40] sm:$0xff] %v161_v23  ;;  %v139_v26 = vadd.f32 %v138_v24, %v35_v19  ;;  %v163_v27 = vadd.f32 %v162_v25, %v35_v19 }
  0xca   :  { %v142_v28 = vpop.f32.mrf.mxu0  ;;  %v166_v29 = vpop.f32.mrf.mxu1 }
  0xcb   :  { %184 = vst [vmem:[%s337_s3 + $0x8] sm:$0xff] %v139_v26  ;;  %192 = vst [vmem:[%s337_s3 + $0x48] sm:$0xff] %v163_v27  ;;  %v143_v30 = vadd.f32 %v142_v28, %v31_v18  ;;  %v167_v31 = vadd.f32 %v166_v29, %v31_v18 }
  0xcc   :  { %v144_v32 = vpop.f32.mrf.mxu0  ;;  %v168_v33 = vpop.f32.mrf.mxu1 }
  0xcd   :  { %185 = vst [vmem:[%s337_s3 + $0x10] sm:$0xff] %v143_v30  ;;  %193 = vst [vmem:[%s337_s3 + $0x50] sm:$0xff] %v167_v31  ;;  %v145_v34 = vadd.f32 %v144_v32, %v35_v19  ;;  %v169_v35 = vadd.f32 %v168_v33, %v35_v19 }
  0xce   :  { %v148_v36 = vpop.f32.mrf.mxu0  ;;  %v172_v37 = vpop.f32.mrf.mxu1 }
  0xcf   :  { %186 = vst [vmem:[%s337_s3 + $0x18] sm:$0xff] %v145_v34  ;;  %194 = vst [vmem:[%s337_s3 + $0x58] sm:$0xff] %v169_v35  ;;  %v149_v38 = vadd.f32 %v148_v36, %v31_v18  ;;  %v173_v39 = vadd.f32 %v172_v37, %v31_v18 }
  0xd0   :  { %v150_v40 = vpop.f32.mrf.mxu0  ;;  %v174_v41 = vpop.f32.mrf.mxu1 }
  0xd1   :  { %187 = vst [vmem:[%s337_s3 + $0x20] sm:$0xff] %v149_v38  ;;  %195 = vst [vmem:[%s337_s3 + $0x60] sm:$0xff] %v173_v39  ;;  %v151_v42 = vadd.f32 %v150_v40, %v35_v19  ;;  %v175_v43 = vadd.f32 %v174_v41, %v35_v19 }
  0xd2   :  { %v154_v44 = vpop.f32.mrf.mxu0  ;;  %v178_v45 = vpop.f32.mrf.mxu1 }
  0xd3   :  { %188 = vst [vmem:[%s337_s3 + $0x28] sm:$0xff] %v151_v42  ;;  %196 = vst [vmem:[%s337_s3 + $0x68] sm:$0xff] %v175_v43  ;;  %v155_v46 = vadd.f32 %v154_v44, %v31_v18  ;;  %v179_v47 = vadd.f32 %v178_v45, %v31_v18 }
  0xd4   :  { %v156_v48 = vpop.f32.mrf.mxu0  ;;  %v180_v49 = vpop.f32.mrf.mxu1 }
  0xd5   :  { %189 = vst [vmem:[%s337_s3 + $0x30] sm:$0xff] %v155_v46  ;;  %197 = vst [vmem:[%s337_s3 + $0x70] sm:$0xff] %v179_v47  ;;  %v157_v50 = vadd.f32 %v156_v48, %v35_v19  ;;  %v181_v51 = vadd.f32 %v180_v49, %v35_v19 }
  0xd7   :  { %190 = vst [vmem:[%s337_s3 + $0x38] sm:$0xff] %v157_v50  ;;  %198 = vst [vmem:[%s337_s3 + $0x78] sm:$0xff] %v181_v51 }

// kernel: _lambda_.4
= control target key start
LH: loop header
LB: loop body
LE: loop exit
PB: predicated region body
PF: predicated region fallthrough
CT: control target
= control target key end

     0   :  { %vm15_vm0 = vcmask 523264   ;;  %v961_v3 = vmov 0.0   ;;  %s962_s3 = smov 64   ;;  %s1306_s1 = inlined_call_operand.vmem [shape: f32[64,256], index: 1, kind: input, shape index: {}]   ;;  %s1307_s0 = inlined_call_operand.vmem [shape: f32[8,8,256], index: 0, kind: input, shape index: {}]   ;;  %s1308_s2 = inlined_call_operand.vmem [shape: f32[8,8,64], index: 2, kind: output, shape index: {}]  }
   0x1   :  { %v981_v0 = vld [vmem:[%s1306_s1 + $0x78] sm:$0xff]  ;;  %v986_v1 = vld [vmem:[%s1306_s1 + $0x70] sm:$0xff]  ;;  %v991_v2 = vld [vmem:[%s1306_s1 + $0x68] sm:$0xff]  ;;  %106 = vmatprep.mubr.f32.mxu0 %v961_v3  ;;  %16 = vst.msk [vmem:[#allocation2] sm:$0xff] %vm15_vm0, %v961_v3  ;;  %211 = vmatprep.mubr.f32.mxu1 %v961_v3 }
   0x2   :  { %17 = vst.msk [vmem:[#allocation3] sm:$0xff] %vm15_vm0, %v961_v3  ;;  %58 = vmatprep.subr.mxu0 %v981_v0  ;;  %v1003_v4 = vld [vmem:[%s1306_s1 + $0x60] sm:$0xff]  ;;  %163 = vmatprep.subr.mxu1 %v981_v0  ;;  %v1010_v5 = vld [vmem:[%s1306_s1 + $0x58] sm:$0xff]  ;;  %v1017_v6 = vld [vmem:[%s1306_s1 + $0x50] sm:$0xff] }
   0x3   :  { %59 = vmatpush1.msra.mxu0 %v986_v1  ;;  %164 = vmatpush1.msra.mxu1 %v986_v1  ;;  %v1024_v7 = vld [vmem:[%s1306_s1 + $0x48] sm:$0xff]  ;;  %v1031_v8 = vld [vmem:[%s1306_s1 + $0x40] sm:$0xff]  ;;  %v1038_v9 = vld [vmem:[%s1306_s1 + $0x38] sm:$0xff] }
   0x4   :  { %60 = vmatprep.subr.mxu0 %v991_v2  ;;  %165 = vmatprep.subr.mxu1 %v991_v2  ;;  %v1045_v10 = vld [vmem:[%s1306_s1 + $0x30] sm:$0xff]  ;;  %v1052_v12 = vld [vmem:[%s1306_s1 + $0x28] sm:$0xff]  ;;  %v1059_v13 = vld [vmem:[%s1306_s1 + $0x20] sm:$0xff] }
   0x5   :  { %61 = vmatpush1.msra.mxu0 %v1003_v4  ;;  %166 = vmatpush1.msra.mxu1 %v1003_v4  ;;  %v1066_v14 = vld [vmem:[%s1306_s1 + $0x18] sm:$0xff]  ;;  %v1073_v15 = vld [vmem:[%s1306_s1 + $0x10] sm:$0xff]  ;;  %v1080_v16 = vld [vmem:[%s1306_s1 + $0x8] sm:$0xff] }
   0x6   :  { %62 = vmatprep.subr.mxu0 %v1010_v5  ;;  %167 = vmatprep.subr.mxu1 %v1010_v5  ;;  %v1087_v17 = vld [vmem:[%s1306_s1] sm:$0xff]  ;;  %v37_v22 = vld [vmem:[%s1307_s0 + $0x8] sm:$0xff]  ;;  %v867_v42 = vld [vmem:[%s1307_s0 + $0x10] sm:$0xff] }
   0x7   :  { %63 = vmatpush1.msra.mxu0 %v1017_v6  ;;  %168 = vmatpush1.msra.mxu1 %v1017_v6  ;;  %v36_v19 = vld [vmem:[%s1307_s0] sm:$0xff]  ;;  %v868_v45 = vld [vmem:[%s1307_s0 + $0x18] sm:$0xff] }
   0x8   :  { %64 = vmatprep.subr.mxu0 %v1024_v7  ;;  %169 = vmatprep.subr.mxu1 %v1024_v7  ;;  %v34_v18 = vld [vmem:[#allocation2] sm:$0xff] }
   0x9   :  { %v35_v11 = vld [vmem:[#allocation3] sm:$0xff]  ;;  %65 = vmatpush1.msra.mxu0 %v1031_v8  ;;  %170 = vmatpush1.msra.mxu1 %v1031_v8 }
   0xa   :  { %125 = vrot.lane.b32.xlu0 %v35_v11, %s962_s3  ;;  %66 = vmatprep.subr.mxu0 %v1038_v9  ;;  %v871_v11 = vld [vmem:[%s1307_s0 + $0x20] sm:$0xff] }
   0xb   :  { %67 = vmatpush1.msra.mxu0 %v1045_v10  ;;  %171 = vmatprep.subr.mxu1 %v1038_v9 }
   0xc   :  { %68 = vmatprep.subr.mxu0 %v1052_v12  ;;  %172 = vmatpush1.msra.mxu1 %v1045_v10 }
   0xd   :  { %69 = vmatpush1.msra.mxu0 %v1059_v13  ;;  %173 = vmatprep.subr.mxu1 %v1052_v12 }
   0xe   :  { %70 = vmatprep.subr.mxu0 %v1066_v14  ;;  %174 = vmatpush1.msra.mxu1 %v1059_v13 }
   0xf   :  { %71 = vmatpush1.msra.mxu0 %v1073_v15  ;;  %175 = vmatprep.subr.mxu1 %v1066_v14 }
  0x10   :  { %72 = vmatprep.subr.mxu0 %v1080_v16  ;;  %176 = vmatpush1.msra.mxu1 %v1073_v15 }
  0x11   :  { %73 = vmatpush1.msra.mxu0 %v1087_v17  ;;  %177 = vmatprep.subr.mxu1 %v1080_v16 }
  0x12   :  { %866 = vmatmul.mubr.msk.f32.vlgmr.msra.gmra.mxu0 %vm15_vm0, %v34_v18  ;;  %178 = vmatpush1.msra.mxu1 %v1087_v17 }
  0x13   :  { %265 = vmatprep.subr.mxu0 %v981_v0  ;;  %313 = vmatprep.mubr.f32.mxu0 %v961_v3 }
  0x14   :  { %266 = vmatpush1.msra.mxu0 %v986_v1  ;;  %367 = vmatprep.subr.mxu1 %v981_v0 }
  0x15   :  { %267 = vmatprep.subr.mxu0 %v991_v2 }
  0x16   :  { %268 = vmatpush1.msra.mxu0 %v1003_v4 }
  0x17   :  { %269 = vmatprep.subr.mxu0 %v1010_v5 }
  0x18   :  { %270 = vmatpush1.msra.mxu0 %v1017_v6 }
  0x19   :  { %271 = vmatprep.subr.mxu0 %v1024_v7 }
  0x1a   :  { %272 = vmatpush1.msra.mxu0 %v1031_v8 }
  0x1b   :  { %273 = vmatprep.subr.mxu0 %v1038_v9 }
  0x1c   :  { %274 = vmatpush1.msra.mxu0 %v1045_v10 }
  0x1d   :  { %275 = vmatprep.subr.mxu0 %v1052_v12 }
  0x1e   :  { %276 = vmatpush1.msra.mxu0 %v1059_v13 }
  0x1f   :  { %277 = vmatprep.subr.mxu0 %v1066_v14 }
  0x20   :  { %278 = vmatpush1.msra.mxu0 %v1073_v15 }
  0x21   :  { %279 = vmatprep.subr.mxu0 %v1080_v16 }
  0x22   :  { %280 = vmatpush1.msra.mxu0 %v1087_v17 }
  0x23   :  { %469 = vmatprep.subr.mxu0 %v981_v0 }
  0x7c   :  { %v126_v32 = vpop.permute.xlu0 %125 }
  0xd2   :  { %v108_v20 = vpop.f32.mrf.mxu0 }
  0xd3   :  { %v113_v21 = vadd.f32 %v108_v20, %v36_v19  ;;  %v872_v20 = vld [vmem:[%s1307_s0 + $0x28] sm:$0xff] }
  0xd4   :  { %v110_v23 = vpop.f32.mrf.mxu0 }
  0xd5   :  { %v115_v24 = vmul.f32 0.5, %v113_v21  ;;  %v114_v25 = vadd.f32 %v110_v23, %v37_v22 }
  0xd7   :  { %897 = vtanh.f32 %v115_v24  ;;  %v120_v31 = vmul.f32 0.5, %v114_v25 }
  0xd8   :  { %899 = vtanh.f32 %v114_v25 }
  0xd9   :  { %901 = vtanh.f32 %v120_v31 }
  0xe4   :  { %v898_v26 = vpop.eup %897 }
  0xe5   :  { %v117_v27 = vmul.f32 0.5, %v898_v26  ;;  %v900_v29 = vpop.eup %899 }
  0xe6   :  { %v902_v36 = vpop.eup %901 }
  0xe7   :  { %v118_v28 = vadd.f32 0.5, %v117_v27  ;;  %v122_v37 = vmul.f32 0.5, %v902_v36 }
  0xe9   :  { %v129_v30 = vmul.f32 %v900_v29, %v118_v28  ;;  %v128_v33 = vmul.f32 %v126_v32, %v118_v28  ;;  %v123_v38 = vadd.f32 0.5, %v122_v37 }
  0xeb   :  { %131 = vrot.lane.b32.xlu0 %v129_v30, %s962_s3 }
 0x15d   :  { %v132_v34 = vpop.permute.xlu0 %131 }
 0x15e   :  { %v134_v35 = vadd.f32 %v132_v34, %v128_v33 }
 0x160   :  { %903 = vtanh.f32 %v134_v35 }
 0x16d   :  { %v904_v39 = vpop.eup %903 }
 0x16e   :  { %v136_v40 = vmul.f32 %v904_v39, %v123_v38  ;;  %v875_v39 = vld [vmem:[%s1307_s0 + $0x30] sm:$0xff] }
 0x170   :  { %138 = vrot.lane.b32.xlu1 %v136_v40, %s962_s3 }
 0x1e2   :  { %v139_v41 = vpop.permute.xlu1 %138 }
 0x1e3   :  { %141 = vst.msk [vmem:[%s1308_s2] sm:$0xff] %vm15_vm0, %v139_v41  ;;  %869 = vmatmul.mubr.msk.f32.vlgmr.msra.gmra.mxu1 %vm15_vm0, %v139_v41 }
 0x1e4   :  { %368 = vmatpush1.msra.mxu1 %v986_v1  ;;  %415 = vmatprep.mubr.f32.mxu1 %v961_v3 }
 0x1e5   :  { %369 = vmatprep.subr.mxu1 %v991_v2 }
 0x1e6   :  { %370 = vmatpush1.msra.mxu1 %v1003_v4 }
 0x1e7   :  { %371 = vmatprep.subr.mxu1 %v1010_v5 }
 0x1e8   :  { %372 = vmatpush1.msra.mxu1 %v1017_v6 }
 0x1e9   :  { %373 = vmatprep.subr.mxu1 %v1024_v7 }
 0x1ea   :  { %374 = vmatpush1.msra.mxu1 %v1031_v8 }
 0x1eb   :  { %375 = vmatprep.subr.mxu1 %v1038_v9 }
 0x1ec   :  { %376 = vmatpush1.msra.mxu1 %v1045_v10 }
 0x1ed   :  { %377 = vmatprep.subr.mxu1 %v1052_v12 }
 0x1ee   :  { %378 = vmatpush1.msra.mxu1 %v1059_v13 }
 0x1ef   :  { %379 = vmatprep.subr.mxu1 %v1066_v14 }
 0x1f0   :  { %380 = vmatpush1.msra.mxu1 %v1073_v15 }
 0x1f1   :  { %381 = vmatprep.subr.mxu1 %v1080_v16 }
 0x1f2   :  { %382 = vmatpush1.msra.mxu1 %v1087_v17 }
 0x1f3   :  { %571 = vmatprep.subr.mxu1 %v981_v0 }
 0x2a3   :  { %v213_v43 = vpop.f32.mrf.mxu1 }
 0x2a4   :  { %v218_v44 = vadd.f32 %v867_v42, %v213_v43  ;;  %v876_v42 = vld [vmem:[%s1307_s0 + $0x38] sm:$0xff] }
 0x2a5   :  { %v215_v46 = vpop.f32.mrf.mxu1 }
 0x2a6   :  { %v220_v47 = vmul.f32 0.5, %v218_v44  ;;  %v219_v48 = vadd.f32 %v868_v45, %v215_v46 }
 0x2a8   :  { %905 = vtanh.f32 %v220_v47  ;;  %v225_v54 = vmul.f32 0.5, %v219_v48 }
 0x2a9   :  { %907 = vtanh.f32 %v219_v48 }
 0x2aa   :  { %909 = vtanh.f32 %v225_v54 }
 0x2b5   :  { %v906_v49 = vpop.eup %905 }
 0x2b6   :  { %v222_v50 = vmul.f32 0.5, %v906_v49  ;;  %v908_v52 = vpop.eup %907 }
 0x2b7   :  { %v910_v58 = vpop.eup %909 }
 0x2b8   :  { %v223_v51 = vadd.f32 0.5, %v222_v50  ;;  %v227_v59 = vmul.f32 0.5, %v910_v58 }
 0x2ba   :  { %v230_v53 = vmul.f32 %v908_v52, %v223_v51  ;;  %v229_v55 = vmul.f32 %v223_v51, %v134_v35  ;;  %v228_v60 = vadd.f32 0.5, %v227_v59 }
 0x2bc   :  { %232 = vrot.lane.b32.xlu1 %v230_v53, %s962_s3 }
 0x32e   :  { %v233_v56 = vpop.permute.xlu1 %232 }
 0x32f   :  { %v235_v57 = vadd.f32 %v233_v56, %v229_v55 }
 0x331   :  { %911 = vtanh.f32 %v235_v57 }
 0x33e   :  { %v912_v61 = vpop.eup %911 }
 0x33f   :  { %v237_v62 = vmul.f32 %v912_v61, %v228_v60  ;;  %v879_v60 = vld [vmem:[%s1307_s0 + $0x40] sm:$0xff] }
 0x341   :  { %239 = vrot.lane.b32.xlu0 %v237_v62, %s962_s3 }
 0x3b3   :  { %v240_v63 = vpop.permute.xlu0 %239 }
 0x3b4   :  { %870 = vst.msk [vmem:[%s1308_s2 + $0x8] sm:$0xff] %vm15_vm0, %v240_v63  ;;  %873 = vmatmul.mubr.msk.f32.vlgmr.msra.gmra.mxu0 %vm15_vm0, %v240_v63  ;;  %v880_v63 = vld [vmem:[%s1307_s0 + $0x48] sm:$0xff] }
 0x3b5   :  { %470 = vmatpush1.msra.mxu0 %v986_v1  ;;  %517 = vmatprep.mubr.f32.mxu0 %v961_v3 }
 0x3b6   :  { %471 = vmatprep.subr.mxu0 %v991_v2 }
 0x3b7   :  { %472 = vmatpush1.msra.mxu0 %v1003_v4 }
 0x3b8   :  { %473 = vmatprep.subr.mxu0 %v1010_v5 }
 0x3b9   :  { %474 = vmatpush1.msra.mxu0 %v1017_v6 }
 0x3ba   :  { %475 = vmatprep.subr.mxu0 %v1024_v7 }
 0x3bb   :  { %476 = vmatpush1.msra.mxu0 %v1031_v8 }
 0x3bc   :  { %477 = vmatprep.subr.mxu0 %v1038_v9 }
 0x3bd   :  { %478 = vmatpush1.msra.mxu0 %v1045_v10 }
 0x3be   :  { %479 = vmatprep.subr.mxu0 %v1052_v12 }
 0x3bf   :  { %480 = vmatpush1.msra.mxu0 %v1059_v13 }
 0x3c0   :  { %481 = vmatprep.subr.mxu0 %v1066_v14 }
 0x3c1   :  { %482 = vmatpush1.msra.mxu0 %v1073_v15 }
 0x3c2   :  { %483 = vmatprep.subr.mxu0 %v1080_v16 }
 0x3c3   :  { %484 = vmatpush1.msra.mxu0 %v1087_v17 }
 0x3c4   :  { %673 = vmatprep.subr.mxu0 %v981_v0 }
 0x474   :  { %v315_v18 = vpop.f32.mrf.mxu0 }
 0x475   :  { %v320_v19 = vadd.f32 %v871_v11, %v315_v18 }
 0x476   :  { %v317_v21 = vpop.f32.mrf.mxu0 }
 0x477   :  { %v322_v22 = vmul.f32 0.5, %v320_v19  ;;  %v321_v23 = vadd.f32 %v872_v20, %v317_v21 }
 0x479   :  { %913 = vtanh.f32 %v322_v22  ;;  %v327_v29 = vmul.f32 0.5, %v321_v23 }
 0x47a   :  { %915 = vtanh.f32 %v321_v23 }
 0x47b   :  { %917 = vtanh.f32 %v327_v29 }
 0x486   :  { %v914_v24 = vpop.eup %913 }
 0x487   :  { %v324_v25 = vmul.f32 0.5, %v914_v24  ;;  %v916_v27 = vpop.eup %915 }
 0x488   :  { %v918_v33 = vpop.eup %917 }
 0x489   :  { %v325_v26 = vadd.f32 0.5, %v324_v25  ;;  %v329_v34 = vmul.f32 0.5, %v918_v33 }
 0x48b   :  { %v332_v28 = vmul.f32 %v916_v27, %v325_v26  ;;  %v331_v30 = vmul.f32 %v325_v26, %v235_v57  ;;  %v330_v35 = vadd.f32 0.5, %v329_v34 }
 0x48d   :  { %334 = vrot.lane.b32.xlu1 %v332_v28, %s962_s3 }
 0x4ff   :  { %v335_v31 = vpop.permute.xlu1 %334 }
 0x500   :  { %v337_v32 = vadd.f32 %v335_v31, %v331_v30 }
 0x502   :  { %919 = vtanh.f32 %v337_v32 }
 0x50f   :  { %v920_v36 = vpop.eup %919 }
 0x510   :  { %v339_v37 = vmul.f32 %v920_v36, %v330_v35 }
 0x512   :  { %341 = vrot.lane.b32.xlu0 %v339_v37, %s962_s3 }
 0x584   :  { %v342_v38 = vpop.permute.xlu0 %341 }
 0x585   :  { %874 = vst.msk [vmem:[%s1308_s2 + $0x10] sm:$0xff] %vm15_vm0, %v342_v38  ;;  %877 = vmatmul.mubr.msk.f32.vlgmr.msra.gmra.mxu1 %vm15_vm0, %v342_v38 }
 0x586   :  { %572 = vmatpush1.msra.mxu1 %v986_v1  ;;  %619 = vmatprep.mubr.f32.mxu1 %v961_v3 }
 0x587   :  { %573 = vmatprep.subr.mxu1 %v991_v2 }
 0x588   :  { %574 = vmatpush1.msra.mxu1 %v1003_v4 }
 0x589   :  { %575 = vmatprep.subr.mxu1 %v1010_v5 }
 0x58a   :  { %576 = vmatpush1.msra.mxu1 %v1017_v6 }
 0x58b   :  { %577 = vmatprep.subr.mxu1 %v1024_v7 }
 0x58c   :  { %578 = vmatpush1.msra.mxu1 %v1031_v8 }
 0x58d   :  { %579 = vmatprep.subr.mxu1 %v1038_v9 }
 0x58e   :  { %580 = vmatpush1.msra.mxu1 %v1045_v10 }
 0x58f   :  { %581 = vmatprep.subr.mxu1 %v1052_v12 }
 0x590   :  { %582 = vmatpush1.msra.mxu1 %v1059_v13 }
 0x591   :  { %583 = vmatprep.subr.mxu1 %v1066_v14 }
 0x592   :  { %584 = vmatpush1.msra.mxu1 %v1073_v15 }
 0x593   :  { %585 = vmatprep.subr.mxu1 %v1080_v16 }
 0x594   :  { %586 = vmatpush1.msra.mxu1 %v1087_v17 }
 0x595   :  { %775 = vmatprep.subr.mxu1 %v981_v0 }
 0x645   :  { %v417_v40 = vpop.f32.mrf.mxu1 }
 0x646   :  { %v422_v41 = vadd.f32 %v875_v39, %v417_v40 }
 0x647   :  { %v419_v43 = vpop.f32.mrf.mxu1 }
 0x648   :  { %v424_v44 = vmul.f32 0.5, %v422_v41  ;;  %v423_v45 = vadd.f32 %v876_v42, %v419_v43  ;;  %v887_v41 = vld [vmem:[%s1307_s0 + $0x60] sm:$0xff] }
 0x64a   :  { %921 = vtanh.f32 %v424_v44  ;;  %v429_v50 = vmul.f32 0.5, %v423_v45  ;;  %v888_v44 = vld [vmem:[%s1307_s0 + $0x68] sm:$0xff] }
 0x64b   :  { %923 = vtanh.f32 %v423_v45 }
 0x64c   :  { %925 = vtanh.f32 %v429_v50 }
 0x657   :  { %v922_v46 = vpop.eup %921 }
 0x658   :  { %v426_v47 = vmul.f32 0.5, %v922_v46  ;;  %v924_v49 = vpop.eup %923 }
 0x659   :  { %v926_v54 = vpop.eup %925 }
 0x65a   :  { %v427_v48 = vadd.f32 0.5, %v426_v47  ;;  %v431_v55 = vmul.f32 0.5, %v926_v54 }
 0x65c   :  { %v434_v0 = vmul.f32 %v924_v49, %v427_v48  ;;  %v433_v51 = vmul.f32 %v427_v48, %v337_v32  ;;  %v432_v56 = vadd.f32 0.5, %v431_v55 }
 0x65e   :  { %436 = vrot.lane.b32.xlu1 %v434_v0, %s962_s3 }
 0x6d0   :  { %v437_v52 = vpop.permute.xlu1 %436 }
 0x6d1   :  { %v439_v53 = vadd.f32 %v437_v52, %v433_v51 }
 0x6d3   :  { %927 = vtanh.f32 %v439_v53 }
 0x6e0   :  { %v928_v57 = vpop.eup %927 }
 0x6e1   :  { %v441_v58 = vmul.f32 %v928_v57, %v432_v56 }
 0x6e3   :  { %443 = vrot.lane.b32.xlu0 %v441_v58, %s962_s3 }
 0x755   :  { %v444_v59 = vpop.permute.xlu0 %443 }
 0x756   :  { %878 = vst.msk [vmem:[%s1308_s2 + $0x18] sm:$0xff] %vm15_vm0, %v444_v59  ;;  %881 = vmatmul.mubr.msk.f32.vlgmr.msra.gmra.mxu0 %vm15_vm0, %v444_v59 }
 0x757   :  { %674 = vmatpush1.msra.mxu0 %v986_v1  ;;  %721 = vmatprep.mubr.f32.mxu0 %v961_v3 }
 0x758   :  { %675 = vmatprep.subr.mxu0 %v991_v2 }
 0x759   :  { %676 = vmatpush1.msra.mxu0 %v1003_v4 }
 0x75a   :  { %677 = vmatprep.subr.mxu0 %v1010_v5 }
 0x75b   :  { %678 = vmatpush1.msra.mxu0 %v1017_v6 }
 0x75c   :  { %679 = vmatprep.subr.mxu0 %v1024_v7 }
 0x75d   :  { %680 = vmatpush1.msra.mxu0 %v1031_v8 }
 0x75e   :  { %681 = vmatprep.subr.mxu0 %v1038_v9 }
 0x75f   :  { %682 = vmatpush1.msra.mxu0 %v1045_v10 }
 0x760   :  { %683 = vmatprep.subr.mxu0 %v1052_v12 }
 0x761   :  { %684 = vmatpush1.msra.mxu0 %v1059_v13 }
 0x762   :  { %685 = vmatprep.subr.mxu0 %v1066_v14 }
 0x763   :  { %686 = vmatpush1.msra.mxu0 %v1073_v15 }
 0x764   :  { %687 = vmatprep.subr.mxu0 %v1080_v16 }
 0x765   :  { %688 = vmatpush1.msra.mxu0 %v1087_v17 }
 0x816   :  { %v519_v61 = vpop.f32.mrf.mxu0 }
 0x817   :  { %v524_v62 = vadd.f32 %v879_v60, %v519_v61 }
 0x818   :  { %v521_v11 = vpop.f32.mrf.mxu0 }
 0x819   :  { %v526_v18 = vmul.f32 0.5, %v524_v62  ;;  %v525_v19 = vadd.f32 %v880_v63, %v521_v11  ;;  %v891_v62 = vld [vmem:[%s1307_s0 + $0x70] sm:$0xff] }
 0x81b   :  { %929 = vtanh.f32 %v526_v18  ;;  %v531_v25 = vmul.f32 0.5, %v525_v19  ;;  %v892_v18 = vld [vmem:[%s1307_s0 + $0x78] sm:$0xff] }
 0x81c   :  { %931 = vtanh.f32 %v525_v19 }
 0x81d   :  { %933 = vtanh.f32 %v531_v25 }
 0x828   :  { %v930_v20 = vpop.eup %929 }
 0x829   :  { %v528_v21 = vmul.f32 0.5, %v930_v20  ;;  %v932_v23 = vpop.eup %931 }
 0x82a   :  { %v934_v29 = vpop.eup %933 }
 0x82b   :  { %v529_v22 = vadd.f32 0.5, %v528_v21  ;;  %v533_v30 = vmul.f32 0.5, %v934_v29 }
 0x82d   :  { %v536_v24 = vmul.f32 %v932_v23, %v529_v22  ;;  %v535_v26 = vmul.f32 %v529_v22, %v439_v53  ;;  %v534_v31 = vadd.f32 0.5, %v533_v30 }
 0x82f   :  { %538 = vrot.lane.b32.xlu1 %v536_v24, %s962_s3 }
 0x8a1   :  { %v539_v27 = vpop.permute.xlu1 %538 }
 0x8a2   :  { %v541_v28 = vadd.f32 %v539_v27, %v535_v26 }
 0x8a4   :  { %935 = vtanh.f32 %v541_v28 }
 0x8b1   :  { %v936_v32 = vpop.eup %935 }
 0x8b2   :  { %v543_v33 = vmul.f32 %v936_v32, %v534_v31 }
 0x8b4   :  { %545 = vrot.lane.b32.xlu0 %v543_v33, %s962_s3 }
 0x926   :  { %v546_v34 = vpop.permute.xlu0 %545 }
 0x927   :  { %882 = vst.msk [vmem:[%s1308_s2 + $0x20] sm:$0xff] %vm15_vm0, %v546_v34  ;;  %885 = vmatmul.mubr.msk.f32.vlgmr.msra.gmra.mxu1 %vm15_vm0, %v546_v34 }
 0x928   :  { %776 = vmatpush1.msra.mxu1 %v986_v1  ;;  %823 = vmatprep.mubr.f32.mxu1 %v961_v3  ;;  %v883_v1 = vld [vmem:[%s1307_s0 + $0x50] sm:$0xff] }
 0x929   :  { %777 = vmatprep.subr.mxu1 %v991_v2 }
 0x92a   :  { %778 = vmatpush1.msra.mxu1 %v1003_v4  ;;  %v884_v4 = vld [vmem:[%s1307_s0 + $0x58] sm:$0xff] }
 0x92b   :  { %779 = vmatprep.subr.mxu1 %v1010_v5 }
 0x92c   :  { %780 = vmatpush1.msra.mxu1 %v1017_v6 }
 0x92d   :  { %781 = vmatprep.subr.mxu1 %v1024_v7 }
 0x92e   :  { %782 = vmatpush1.msra.mxu1 %v1031_v8 }
 0x92f   :  { %783 = vmatprep.subr.mxu1 %v1038_v9 }
 0x930   :  { %784 = vmatpush1.msra.mxu1 %v1045_v10 }
 0x931   :  { %785 = vmatprep.subr.mxu1 %v1052_v12 }
 0x932   :  { %786 = vmatpush1.msra.mxu1 %v1059_v13 }
 0x933   :  { %787 = vmatprep.subr.mxu1 %v1066_v14 }
 0x934   :  { %788 = vmatpush1.msra.mxu1 %v1073_v15 }
 0x935   :  { %789 = vmatprep.subr.mxu1 %v1080_v16 }
 0x936   :  { %790 = vmatpush1.msra.mxu1 %v1087_v17 }
 0x9e7   :  { %v621_v2 = vpop.f32.mrf.mxu1 }
 0x9e8   :  { %v626_v3 = vadd.f32 %v883_v1, %v621_v2 }
 0x9e9   :  { %v623_v5 = vpop.f32.mrf.mxu1 }
 0x9ea   :  { %v628_v6 = vmul.f32 0.5, %v626_v3  ;;  %v627_v7 = vadd.f32 %v884_v4, %v623_v5 }
 0x9ec   :  { %937 = vtanh.f32 %v628_v6  ;;  %v633_v14 = vmul.f32 0.5, %v627_v7 }
 0x9ed   :  { %939 = vtanh.f32 %v627_v7 }
 0x9ee   :  { %941 = vtanh.f32 %v633_v14 }
 0x9f9   :  { %v938_v8 = vpop.eup %937 }
 0x9fa   :  { %v630_v9 = vmul.f32 0.5, %v938_v8  ;;  %v940_v12 = vpop.eup %939 }
 0x9fb   :  { %v942_v35 = vpop.eup %941 }
 0x9fc   :  { %v631_v10 = vadd.f32 0.5, %v630_v9  ;;  %v635_v36 = vmul.f32 0.5, %v942_v35 }
 0x9fe   :  { %v638_v13 = vmul.f32 %v940_v12, %v631_v10  ;;  %v637_v15 = vmul.f32 %v631_v10, %v541_v28  ;;  %v636_v37 = vadd.f32 0.5, %v635_v36 }
 0xa00   :  { %640 = vrot.lane.b32.xlu1 %v638_v13, %s962_s3 }
 0xa72   :  { %v641_v16 = vpop.permute.xlu1 %640 }
 0xa73   :  { %v643_v17 = vadd.f32 %v641_v16, %v637_v15 }
 0xa75   :  { %943 = vtanh.f32 %v643_v17 }
 0xa82   :  { %v944_v38 = vpop.eup %943 }
 0xa83   :  { %v645_v39 = vmul.f32 %v944_v38, %v636_v37 }
 0xa85   :  { %647 = vrot.lane.b32.xlu0 %v645_v39, %s962_s3 }
 0xaf7   :  { %v648_v40 = vpop.permute.xlu0 %647 }
 0xaf8   :  { %886 = vst.msk [vmem:[%s1308_s2 + $0x28] sm:$0xff] %vm15_vm0, %v648_v40  ;;  %889 = vmatmul.mubr.msk.f32.vlgmr.msra.gmra.mxu0 %vm15_vm0, %v648_v40 }
 0xbb8   :  { %v723_v42 = vpop.f32.mrf.mxu0 }
 0xbb9   :  { %v728_v43 = vadd.f32 %v887_v41, %v723_v42 }
 0xbba   :  { %v725_v45 = vpop.f32.mrf.mxu0 }
 0xbbb   :  { %v730_v46 = vmul.f32 0.5, %v728_v43  ;;  %v729_v47 = vadd.f32 %v888_v44, %v725_v45 }
 0xbbd   :  { %945 = vtanh.f32 %v730_v46  ;;  %v735_v52 = vmul.f32 0.5, %v729_v47 }
 0xbbe   :  { %947 = vtanh.f32 %v729_v47 }
 0xbbf   :  { %949 = vtanh.f32 %v735_v52 }
 0xbca   :  { %v946_v48 = vpop.eup %945 }
 0xbcb   :  { %v732_v49 = vmul.f32 0.5, %v946_v48  ;;  %v948_v50 = vpop.eup %947 }
 0xbcc   :  { %v950_v56 = vpop.eup %949 }
 0xbcd   :  { %v733_v0 = vadd.f32 0.5, %v732_v49  ;;  %v737_v57 = vmul.f32 0.5, %v950_v56 }
 0xbcf   :  { %v740_v51 = vmul.f32 %v948_v50, %v733_v0  ;;  %v739_v53 = vmul.f32 %v733_v0, %v643_v17  ;;  %v738_v58 = vadd.f32 0.5, %v737_v57 }
 0xbd1   :  { %742 = vrot.lane.b32.xlu1 %v740_v51, %s962_s3 }
 0xc43   :  { %v743_v54 = vpop.permute.xlu1 %742 }
 0xc44   :  { %v745_v55 = vadd.f32 %v743_v54, %v739_v53 }
 0xc46   :  { %951 = vtanh.f32 %v745_v55 }
 0xc53   :  { %v952_v59 = vpop.eup %951 }
 0xc54   :  { %v747_v60 = vmul.f32 %v952_v59, %v738_v58 }
 0xc56   :  { %749 = vrot.lane.b32.xlu0 %v747_v60, %s962_s3 }
 0xcc8   :  { %v750_v61 = vpop.permute.xlu0 %749 }
 0xcc9   :  { %890 = vst.msk [vmem:[%s1308_s2 + $0x30] sm:$0xff] %vm15_vm0, %v750_v61  ;;  %893 = vmatmul.mubr.msk.f32.vlgmr.msra.gmra.mxu1 %vm15_vm0, %v750_v61 }
 0xd89   :  { %v825_v63 = vpop.f32.mrf.mxu1 }
 0xd8a   :  { %v830_v11 = vadd.f32 %v891_v62, %v825_v63 }
 0xd8b   :  { %v827_v19 = vpop.f32.mrf.mxu1 }
 0xd8c   :  { %v832_v20 = vmul.f32 0.5, %v830_v11  ;;  %v831_v21 = vadd.f32 %v892_v18, %v827_v19 }
 0xd8e   :  { %953 = vtanh.f32 %v832_v20  ;;  %v837_v27 = vmul.f32 0.5, %v831_v21 }
 0xd8f   :  { %955 = vtanh.f32 %v831_v21 }
 0xd90   :  { %957 = vtanh.f32 %v837_v27 }
 0xd9b   :  { %v954_v22 = vpop.eup %953 }
 0xd9c   :  { %v834_v23 = vmul.f32 0.5, %v954_v22  ;;  %v956_v25 = vpop.eup %955 }
 0xd9d   :  { %v958_v31 = vpop.eup %957 }
 0xd9e   :  { %v835_v24 = vadd.f32 0.5, %v834_v23  ;;  %v839_v32 = vmul.f32 0.5, %v958_v31 }
 0xda0   :  { %v842_v26 = vmul.f32 %v956_v25, %v835_v24  ;;  %v841_v28 = vmul.f32 %v835_v24, %v745_v55  ;;  %v840_v33 = vadd.f32 0.5, %v839_v32 }
 0xda2   :  { %844 = vrot.lane.b32.xlu1 %v842_v26, %s962_s3 }
 0xe14   :  { %v845_v29 = vpop.permute.xlu1 %844 }
 0xe15   :  { %v847_v30 = vadd.f32 %v845_v29, %v841_v28 }
 0xe17   :  { %959 = vtanh.f32 %v847_v30  ;;  %858 = vrot.lane.b32.xlu1 %v847_v30, %s962_s3 }
 0xe24   :  { %v960_v34 = vpop.eup %959 }
 0xe25   :  { %v849_v1 = vmul.f32 %v960_v34, %v840_v33 }
 0xe27   :  { %851 = vrot.lane.b32.xlu0 %v849_v1, %s962_s3 }
 0xe89   :  { %v859_v2 = vpop.permute.xlu1 %858 }
 0xe8a   :  { %861 = vst.msk [vmem:[#allocation3] sm:$0xff] %vm15_vm0, %v859_v2 }
 0xe99   :  { %v852_v3 = vpop.permute.xlu0 %851 }
 0xe9a   :  { %894 = vst.msk [vmem:[%s1308_s2 + $0x38] sm:$0xff] %vm15_vm0, %v852_v3  ;;  %856 = vst.msk [vmem:[#allocation2] sm:$0xff] %vm15_vm0, %v852_v3 }

</bundles_post_ra>
